<compile_context>
chip_gen: v5e
topology: v5e:2x2
jax: 0.10.0
libtpu: 0.0.40
codegen_flags: <defaults>
</compile_context>

<pallas_src>
import functools
import math

import jax
import jax.numpy as jnp
from jax.experimental import pallas as pl
from jax.experimental.pallas import tpu as pltpu


_LANE = 128
_MAX_LANE_BLOCKS = 32                       # cap lane width at 32 * 128 = 4096 cols
_SMALL_BYPASS_BYTES = 2 * 1024 * 1024       # below this, plain XLA add is better


def _residual_add_kernel(fn_out_ref, x_ref, o_ref):
    # Elementwise hot path of Residual: o = fn(x) + x on one VMEM tile.
    o_ref[...] = fn_out_ref[...] + x_ref[...]


@functools.lru_cache(maxsize=None)
def _chip_params():
    """(target_block_bytes, vmem_limit_cap) gated on physical VMEM size."""
    vmem_phys = None
    try:
        info = pltpu.get_tpu_info()
        vmem_phys = int(getattr(info, "vmem_capacity_bytes", 0)) or None
    except Exception:
        vmem_phys = None
    if vmem_phys is not None and vmem_phys >= 100 * 1024 * 1024:
        # v5e / v6e: 128 MiB physical VMEM -> 8 MiB tiles halve per-step
        # overhead; 6 x 8 MiB double-buffered streams still fit easily.
        return 8 * 1024 * 1024, 96 * 1024 * 1024
    # v7x (64 MiB per TensorCore) or unknown chip: 4 MiB tiles already sit at
    # the >=85% HBM-roofline plateau; keep scoped VMEM well under physical.
    return 4 * 1024 * 1024, 48 * 1024 * 1024


def _pick_2d_view(total):
    """Lane-dense (rows, cols) view: cols = largest multiple of 128 <= 4096
    dividing the element count.  Caller guarantees total % 128 == 0."""
    base = total // _LANE
    k = 1
    for cand in range(min(_MAX_LANE_BLOCKS, base), 0, -1):
        if base % cand == 0:
            k = cand
            break
    cols = _LANE * k
    return total // cols, cols


def _pick_row_tile(rows, cols, dtype_bytes, block_rows, target_block_bytes):
    """Row tile sized for ~target_block_bytes, sublane-aligned per dtype, and
    small enough that the 1-D grid has >= 2 blocks (so both v7x TensorCores
    stream) whenever the tensor spans >= 2 sublane tiles."""
    sub = max(8, 32 // dtype_bytes)          # 8 rows f32 / 16 bf16 / 32 int8
    if block_rows is None:
        block_rows = target_block_bytes // max(1, cols * dtype_bytes)
    block_rows = max(sub, (block_rows // sub) * sub)
    if block_rows >= rows:
        if rows >= 2 * sub:
            # Shrink so cdiv(rows, tm) >= 2 -> megacore sharding has work.
            block_rows = max(sub, (rows // 2 // sub) * sub)
        else:
            block_rows = rows                # tiny: full extent (always legal)
    return min(block_rows, rows)


def residual_add(fn_out: jax.Array, x: jax.Array, *, block_rows=None) -> jax.Array:
    """Residual add: fn_out + x.  Pallas-tiled for large lane-dense tensors,
    plain XLA add otherwise (where XLA is already at roofline / fusable)."""
    assert fn_out.shape == x.shape and fn_out.dtype == x.dtype
    orig_shape = x.shape
    dtype_bytes = jnp.dtype(x.dtype).itemsize
    total = math.prod(orig_shape) if orig_shape else 1
    total_bytes = total * dtype_bytes

    # Bypass: small tensors (call + pipeline overhead dominates) and
    # non-128-divisible element counts (masked partial stores) are strictly
    # better served by XLA's fused elementwise add.
    if total_bytes < _SMALL_BYPASS_BYTES or total % _LANE != 0:
        return fn_out + x

    target_block_bytes, vmem_cap = _chip_params()

    rows, cols = _pick_2d_view(total)
    fn2 = fn_out.reshape(rows, cols)
    x2 = x.reshape(rows, cols)

    tm = _pick_row_tile(rows, cols, dtype_bytes, block_rows, target_block_bytes)
    grid = (pl.cdiv(rows, tm),)              # ragged last block is masked by Pallas

    # Scoped VMEM: 3 streams x 2 pipeline buffers x tile, plus scratch margin,
    # clamped to a per-generation cap (48 MiB on v7x, 96 MiB on v5e/v6e).
    tile_bytes = tm * cols * dtype_bytes
    vmem_limit = min(vmem_cap, max(32 * 1024 * 1024,
                                   3 * 2 * tile_bytes + 8 * 1024 * 1024))

    out = pl.pallas_call(
        _residual_add_kernel,
        out_shape=jax.ShapeDtypeStruct((rows, cols), x.dtype),
        grid_spec=pltpu.PrefetchScalarGridSpec(
            num_scalar_prefetch=0,
            grid=grid,
            in_specs=[
                pl.BlockSpec((tm, cols), lambda i: (i, 0)),
                pl.BlockSpec((tm, cols), lambda i: (i, 0)),
            ],
            out_specs=pl.BlockSpec((tm, cols), lambda i: (i, 0)),
        ),
        # fn_out is consumed only by this add inside Residual.__call__: write
        # the result in place over it (donation); callers that keep fn_out
        # alive get a defensive copy from XLA (correct, just un-aliased).
        input_output_aliases={0: 0},
        cost_estimate=pl.CostEstimate(
            flops=total,
            transcendentals=0,
            bytes_accessed=3 * total * dtype_bytes,
        ),
        compiler_params=pltpu.CompilerParams(
            dimension_semantics=("parallel",),   # shard the row loop across
            vmem_limit_bytes=vmem_limit,         # both v7x TensorCores
        ),
    )(fn2, x2)
    return out.reshape(orig_shape)


class Residual:
    """JAX/Pallas port of the PyTorch Residual module: fn(x, **kwargs) + x."""

    def __init__(self, fn):
        self.fn = fn

    def __call__(self, x, **kwargs):
        return residual_add(self.fn(x, **kwargs), x)


if __name__ == "__main__":
    key = jax.random.PRNGKey(0)
    kx, kw, kb = jax.random.split(key, 3)

    # Transformer-token shapes implied by the module: batch=2, seq=8, hidden=32.
    B, N, D = 2, 8, 32
    x = jax.random.normal(kx, (B, N, D), dtype=jnp.float32)

    # Deterministic example wrapped fn (a simple linear layer); fn is arbitrary
    # by construction in the PyTorch module.
    W = jax.random.normal(kw, (D, D), dtype=jnp.float32) * 0.02
    b = jax.random.normal(kb, (D,), dtype=jnp.float32) * 0.02

    def fn(t):
        return jnp.einsum("bnd,de->bne", t, W) + b

    model = Residual(fn)
    out = jax.block_until_ready(model(x))           # small shape -> XLA bypass path
    ref = fn(x) + x
    assert out.shape == (B, N, D)
    assert jnp.allclose(out, ref, atol=1e-5, rtol=1e-5)

    # Coverage of the Pallas path (shapes large enough to clear the bypass).
    k1, k2, k3, k4 = jax.random.split(key, 4)

    # 1) lane-dense layout, even multi-block grid, f32 (2 MiB).
    a = jax.random.normal(k1, (8, 256, 256), dtype=jnp.float32)
    bb = jax.random.normal(k2, (8, 256, 256), dtype=jnp.float32)
    ref1 = a + bb
    got1 = jax.block_until_ready(residual_add(a, bb))
    assert jnp.allclose(got1, ref1, atol=1e-5, rtol=1e-5)

    # 2) ragged (masked) last block via a forced small row tile, f32 (4.5 MiB).
    c = jax.random.normal(k3, (3, 1024, 384), dtype=jnp.float32)
    d = jax.random.normal(k4, (3, 1024, 384), dtype=jnp.float32)
    ref2 = c + d
    got2 = jax.block_until_ready(residual_add(c, d, block_rows=80))
    assert jnp.allclose(got2, ref2, atol=1e-5, rtol=1e-5)

    # 3) bf16 lane-dense path (2 MiB, sub=16 sublane alignment).
    e = jax.random.normal(k1, (4, 512, 512), dtype=jnp.bfloat16)
    f = jax.random.normal(k2, (4, 512, 512), dtype=jnp.bfloat16)
    ref3 = (e + f).astype(jnp.float32)
    got3 = jax.block_until_ready(residual_add(e, f))
    assert jnp.allclose(got3.astype(jnp.float32), ref3, atol=1e-2, rtol=1e-2)

    # 4) bypass paths: small tensor and non-128-divisible element count (bf16).
    g = jax.random.normal(k3, (2, 48, 50), dtype=jnp.bfloat16)
    h = jax.random.normal(k4, (2, 48, 50), dtype=jnp.bfloat16)
    got4 = jax.block_until_ready(residual_add(g, h))
    assert jnp.allclose(got4.astype(jnp.float32), (g + h).astype(jnp.float32),
                        atol=1e-2, rtol=1e-2)

    print("KERNEL_OK")
</pallas_src>

<mosaic_0001>
module attributes {stable_mosaic.version = 11 : i64} {
  func.func @_residual_add_kernel(%arg0: i32, %arg1: memref<64x4096xf32, #tpu.memory_space<vmem>>, %arg2: memref<64x4096xf32, #tpu.memory_space<vmem>>, %arg3: memref<64x4096xf32, #tpu.memory_space<vmem>>) attributes {dimension_semantics = [#tpu.dimension_semantics<parallel>], iteration_bounds = array<i64: 2>, scalar_prefetch = 0 : i64, scratch_operands = 0 : i64, tpu.core_type = #tpu.core_type<tc>, window_params = [{transform_indices = @transform_0, window_bounds = array<i64: 64, 4096>}, {transform_indices = @transform_1, window_bounds = array<i64: 64, 4096>}, {transform_indices = @transform_2, window_bounds = array<i64: 64, 4096>}]} {
    %c0 = arith.constant 0 : index
    %c0_0 = arith.constant 0 : index
    %0 = vector.load %arg1[%c0, %c0_0] : memref<64x4096xf32, #tpu.memory_space<vmem>>, vector<64x4096xf32>
    %c0_1 = arith.constant 0 : index
    %c0_2 = arith.constant 0 : index
    %1 = vector.load %arg2[%c0_1, %c0_2] : memref<64x4096xf32, #tpu.memory_space<vmem>>, vector<64x4096xf32>
    %2 = arith.addf %0, %1 : vector<64x4096xf32>
    %c0_3 = arith.constant 0 : index
    %c0_4 = arith.constant 0 : index
    %3 = vector.load %arg3[%c0_3, %c0_4] : memref<64x4096xf32, #tpu.memory_space<vmem>>, vector<64x4096xf32>
    tpu.vector_store %arg3[%c0_3, %c0_4], %2 {strides = array<i32>} : memref<64x4096xf32, #tpu.memory_space<vmem>>, vector<64x4096xf32>,
    return
  }
  func.func @transform_0(%arg0: i32) -> (i32, i32) {
    %c0_i32 = arith.constant 0 : i32
    %c0_i32_0 = arith.constant 0 : i32
    return %arg0, %c0_i32 : i32, i32
  }
  func.func @transform_1(%arg0: i32) -> (i32, i32) {
    %c0_i32 = arith.constant 0 : i32
    %c0_i32_0 = arith.constant 0 : i32
    return %arg0, %c0_i32 : i32, i32
  }
  func.func @transform_2(%arg0: i32) -> (i32, i32) {
    %c0_i32 = arith.constant 0 : i32
    %c0_i32_0 = arith.constant 0 : i32
    return %arg0, %c0_i32 : i32, i32
  }
}

</mosaic_0001>

<bundles_post_ra>
// kernel: tpu_custom_call.1
= control target key start
LH: loop header
LB: loop body
LE: loop exit
PB: predicated region body
PF: predicated region fallthrough
CT: control target
= control target key end

     0   :  { %7 = vsyncpa [#allocation3], 0  ;;  %s2415_s0 = inlined_call_operand.hbm [shape: f32[128,4096], index: 0, kind: input, shape index: {}, may-alias: {0,2}]   ;;  %s2416_s1 = inlined_call_operand.vmem [shape: f32[128,4096], index: 1, kind: input, shape index: {}]   ;;  %s2417_s2 = inlined_call_operand.hbm [shape: f32[128,4096], index: 2, kind: output, shape index: {}, may-alias: {0,2}]  }
   0x1   :  { %9 = vsyncpa [#allocation3 + $0x1], 0 }
   0x2   :  { %10 = vsyncpa [#allocation4], 0 }
   0x3   :  { %12 = vsyncpa [#allocation4 + $0x1], 0  ;;  %s1509_s9 = smov 0   ;;  %s1511_s10 = smov 0  }
   0x4   :  { %s1513_s11 = smov 0   ;;  %s1515_s12 = smov 0  }
   0x5 LB: > { %s1530_s13 = sadd.s32 4294967295, %s1488_s12   ;;  %s1318_s14 = sadd.s32 4294967294, %s1488_s12   ;;  %s1488_s12 = sphi %s1515_s12, %s2427_s12   ;;  %s1484_s11 = sphi %s1513_s11, %s2426_s11   ;;  %s1480_s10 = sphi %s1511_s10, %s2425_s10   ;;  %s1476_s9 = sphi %s1509_s9, %s2424_s9  }
   0x6   : > { %s1534_s15 = sadd.s32 1, %s1488_s12   ;;  %s25_s16 = sadd.s32 1, %s1484_s11 }
   0x7   : > { %s22_s17 = ssub.s32 %s1488_s12, %s1534_s15  ;;  %p32_p0 = scmp.ne.s32.totalorder %s1484_s11, %s1480_s10 }
   0x8   : > { %p23_p1 = scmp.eq.s32.totalorder %s22_s17, 0  ;;  %p33_p2 = scmp.eq.s32.totalorder %s1488_s12, 0 }
   0x9   : > { %p38_p3 = scmp.ne.s32.totalorder %s1480_s10, %s1476_s9  ;;  %p39_p4 = scmp.eq.s32.totalorder %s1530_s13, 0 }
   0xa   : > { %s1546_s18 = scalar_select %p23_p1, %s1484_s11, %s25_s16  }
   0xb   : > { %p1548_p5 = por %p33_p2, %p32_p0  ;;  %p1552_p6 = por %p39_p4, %p38_p3 }
   0xc   : > { %p88_p7 = scmp.eq.s32.totalorder %s1530_s13, 1  ;;  %p94_p8 = scmp.eq.s32.totalorder %s1318_s14, 1 }
   0xd   : > { %p1354_p10 = scmp.lt.s32.totalorder %s1488_s12, 2  ;;  %s114_s23 = sand.u32 1, %s1484_s11  }
   0xe   : > { %p1559_p11 = por %p88_p7, %p32_p0  ;;  %p1563_p12 = por %p94_p8, %p38_p3 }
   0xf   : > { %s1338_s24 = sshll.u32 %s1488_s12, 11  ;;  %s1321_s25 = sshll.u32 %s114_s23, 11 }
  0x10   : > { %s124_s28 = scalar_lea.hbm %s2415_s0, %s1338_s24  ;;  %s118_s30 = scalar_lea.vmem [#allocation2], %s1321_s25 }
  0x11   : > { %s125_s29 = sshll.u32 %s124_s28, 4  ;;  %s127_s3 = sshll.u32 %s118_s30, 4  ;;  %s126_s29 = int_to_ptr.hbm [resolvable:$true] %s125_s29  ;;  %s128_s3 = int_to_ptr.vmem [resolvable:$true] %s127_s3 }
  0x12   : > { %p1574_p13 = pnand %p1354_p10, %p1548_p5  ;;  %p1325_p0 = scmp.ge.s32.totalorder %s1488_s12, 1 }
  0x13   : > { %p145_p1 = scmp.lt.s32.totalorder %s1488_s12, 3  ;;  %s115_s5 = scalar_lea.sflag [#allocation3], %s114_s23 }
  0x14   : > { %s1392_s6 = sshra.s32 %s126_s29, 4  ;;  %p1396_p3 = pneg %p1574_p13  ;;  %s1393_s6 = int_to_ptr.hbm [resolvable:$true] %s1392_s6 }
  0x15   : > { %s1394_s7 = scalar_lea.hbm %s1393_s6, 2048  ;;  %s1399_s16 = scalar_lea.hbm %s2415_s0, 4096 }
  0x16   : > { %p1395_p2 = scmp.ne.s32.totalorder %s1393_s6, %s1394_s7  ;;  %p1400_p5 = scmp.lt.s32.totalorder %s1393_s6, %s2415_s0 }
  0x17   : > { %p1401_p8 = scmp.lt.s32.totalorder %s1399_s16, %s1394_s7 }
  0x18   : > { %p1397_p4 = pnand %p1396_p3, %p1395_p2 }
  0x19   : > { %p1402_p10 = por %p1401_p8, %p1400_p5 }
  0x1a   : > { %p1398_p7 = pneg %p1397_p4 }
  0x1c   : > { %p1403_p9 = pnand %p1402_p10, %p1398_p7 }
  0x1e   : > { %1406 = shalt.err (!%p1403_p9)
}
  0x1f   : > { %s1490_s23 = smov 4096   ;;  %s1491_s24 = smov 256  }
  0x20   : > { %1349 = dma.hbm_to_vmem [thread:$0]  (!%p1574_p13), %s126_s29, 32768, %s128_s3, %s115_s5, %s1490_s23, %s1490_s23, %s1491_s24  }
  0x21   : > { %p146_p2 = pnand %p1325_p0, %p145_p1 }
  0x22   : > { %s1595_s25 = sand.u32 (!%p146_p2), 1, %s1480_s10  }
  0x23   : > { %149 = sbr.rel (%p146_p2) target bundleno = 309 (0x135), region = 28  ;;  %s1326_s26 = sshll.u32 (!%p146_p2), %s1595_s25, 11 }
  0x24   : > { %s152_s27 = scalar_lea.sflag (!%p146_p2), [#allocation3], %s1595_s25  ;;  %s1599_s28 = scalar_lea.vmem (!%p146_p2), [#allocation2], %s1326_s26 }
  0x28   : > { %1467 = dma.done.wait (%p1552_p6), %s152_s27, 32768  }
  0x29   : > { %1469 = vsyncadd (%p1552_p6), %s152_s27, 4294934528  ;;  %s1328_s29 = sshll.u32 %s1530_s13, 3  ;;  %v192_v0 = vld [vmem:[%s1599_s28] sm:$0xff]  ;;  %v193_v2 = vld [vmem:[%s1599_s28 + $0x8] sm:$0xff]  ;;  %s1620_s20 = scalar_lea.vmem [#allocation5], %s1326_s26 }
  0x2a   : > { %p185_p9 = scmp.lt.s32.totalorder %s1328_s29, 15  ;;  %v194_v5 = vld [vmem:[%s1599_s28 + $0x10] sm:$0xff]  ;;  %v195_v9 = vld [vmem:[%s1599_s28 + $0x18] sm:$0xff]  ;;  %v196_v11 = vld [vmem:[%s1599_s28 + $0x20] sm:$0xff]  ;;  %s1341_s6 = sshll.u32 %s1530_s13, 11 }
  0x2b   : > { %v197_v14 = vld [vmem:[%s1599_s28 + $0x28] sm:$0xff]  ;;  %v198_v18 = vld [vmem:[%s1599_s28 + $0x30] sm:$0xff]  ;;  %v199_v20 = vld [vmem:[%s1599_s28 + $0x38] sm:$0xff]  ;;  %s1229_s8 = scalar_lea.hbm %s2417_s2, %s1341_s6  ;;  %s1230_s14 = sshll.u32 %s1620_s20, 4  ;;  %s1231_s14 = int_to_ptr.vmem [resolvable:$true] %s1230_s14 }
  0x2c   : > { %s2429_s29 = smov (!%p185_p9, %s1328_s29), 15  ;;  %v200_v23 = vld [vmem:[%s1599_s28 + $0x40] sm:$0xff]  ;;  %v201_v26 = vld [vmem:[%s1599_s28 + $0x48] sm:$0xff]  ;;  %v202_v28 = vld [vmem:[%s1599_s28 + $0x50] sm:$0xff]  ;;  %s1232_s16 = sshll.u32 %s1229_s8, 4  ;;  %s1233_s16 = int_to_ptr.hbm [resolvable:$true] %s1232_s16 }
  0x2d   : > { %s1339_s30 = sshll.u32 %s2429_s29, 8  ;;  %v203_v31 = vld [vmem:[%s1599_s28 + $0x58] sm:$0xff]  ;;  %v204_v34 = vld [vmem:[%s1599_s28 + $0x60] sm:$0xff]  ;;  %v205_v37 = vld [vmem:[%s1599_s28 + $0x68] sm:$0xff]  ;;  %s1217_s17 = scalar_lea.sflag [#allocation4], %s1595_s25 }
  0x2e   : > { %s1609_s5 = scalar_lea.vmem %s2416_s1, %s1339_s30  ;;  %v206_v40 = vld [vmem:[%s1599_s28 + $0x70] sm:$0xff]  ;;  %v207_v43 = vld [vmem:[%s1599_s28 + $0x78] sm:$0xff]  ;;  %v208_v46 = vld [vmem:[%s1599_s28 + $0x80] sm:$0xff]  ;;  %s1436_s19 = sshra.s32 %s1233_s16, 4  ;;  %s1437_s19 = int_to_ptr.hbm [resolvable:$true] %s1436_s19 }
  0x2f   : > { %v448_v1 = vld [vmem:[%s1609_s5] sm:$0xff]  ;;  %v449_v4 = vld [vmem:[%s1609_s5 + $0x8] sm:$0xff]  ;;  %v450_v6 = vld [vmem:[%s1609_s5 + $0x10] sm:$0xff]  ;;  %s1438_s23 = scalar_lea.hbm %s1437_s19, 2048  ;;  %s1442_s27 = scalar_lea.hbm %s2417_s2, 4096 }
  0x30   : > { %v704_v3 = vadd.f32 %v448_v1, %v192_v0  ;;  %v705_v7 = vadd.f32 %v449_v4, %v193_v2  ;;  %v706_v8 = vadd.f32 %v450_v6, %v194_v5  ;;  %v451_v10 = vld [vmem:[%s1609_s5 + $0x18] sm:$0xff]  ;;  %v452_v13 = vld [vmem:[%s1609_s5 + $0x20] sm:$0xff]  ;;  %v453_v15 = vld [vmem:[%s1609_s5 + $0x28] sm:$0xff]  ;;  %p1439_p6 = scmp.ne.s32.totalorder %s1437_s19, %s1438_s23  ;;  %p1443_p1 = scmp.lt.s32.totalorder %s1437_s19, %s2417_s2 }
  0x31   : > { %v707_v12 = vadd.f32 %v451_v10, %v195_v9  ;;  %v708_v16 = vadd.f32 %v452_v13, %v196_v11  ;;  %v709_v17 = vadd.f32 %v453_v15, %v197_v14  ;;  %v454_v19 = vld [vmem:[%s1609_s5 + $0x30] sm:$0xff]  ;;  %v455_v22 = vld [vmem:[%s1609_s5 + $0x38] sm:$0xff]  ;;  %v456_v24 = vld [vmem:[%s1609_s5 + $0x40] sm:$0xff]  ;;  %p1444_p3 = scmp.lt.s32.totalorder %s1442_s27, %s1438_s23 }
  0x32   : > { %960 = vst [vmem:[%s1620_s20] sm:$0xff] %v704_v3  ;;  %v710_v21 = vadd.f32 %v454_v19, %v198_v18  ;;  %v711_v25 = vadd.f32 %v455_v22, %v199_v20  ;;  %v457_v27 = vld [vmem:[%s1609_s5 + $0x48] sm:$0xff]  ;;  %v712_v29 = vadd.f32 %v456_v24, %v200_v23  ;;  %v458_v30 = vld [vmem:[%s1609_s5 + $0x50] sm:$0xff]  ;;  %v459_v32 = vld [vmem:[%s1609_s5 + $0x58] sm:$0xff]  ;;  %p1440_p13 = pnand %p1439_p6, %p1559_p11 }
  0x33   : > { %961 = vst [vmem:[%s1620_s20 + $0x8] sm:$0xff] %v705_v7  ;;  %v713_v33 = vadd.f32 %v457_v27, %v201_v26  ;;  %v460_v35 = vld [vmem:[%s1609_s5 + $0x60] sm:$0xff]  ;;  %v714_v36 = vadd.f32 %v458_v30, %v202_v28  ;;  %v461_v38 = vld [vmem:[%s1609_s5 + $0x68] sm:$0xff]  ;;  %v715_v39 = vadd.f32 %v459_v32, %v203_v31  ;;  %v462_v41 = vld [vmem:[%s1609_s5 + $0x70] sm:$0xff]  ;;  %p1445_p4 = por %p1444_p3, %p1443_p1 }
  0x34   : > { %962 = vst [vmem:[%s1620_s20 + $0x10] sm:$0xff] %v706_v8  ;;  %v716_v42 = vadd.f32 %v460_v35, %v204_v34  ;;  %v463_v44 = vld [vmem:[%s1609_s5 + $0x78] sm:$0xff]  ;;  %v717_v45 = vadd.f32 %v461_v38, %v205_v37  ;;  %v464_v47 = vld [vmem:[%s1609_s5 + $0x80] sm:$0xff]  ;;  %v718_v48 = vadd.f32 %v462_v41, %v206_v40  ;;  %v209_v49 = vld [vmem:[%s1599_s28 + $0x88] sm:$0xff]  ;;  %p1441_p0 = pneg %p1440_p13 }
  0x35   : > { %963 = vst [vmem:[%s1620_s20 + $0x18] sm:$0xff] %v707_v12  ;;  %v465_v50 = vld [vmem:[%s1609_s5 + $0x88] sm:$0xff]  ;;  %v719_v51 = vadd.f32 %v463_v44, %v207_v43  ;;  %v210_v52 = vld [vmem:[%s1599_s28 + $0x90] sm:$0xff]  ;;  %v720_v54 = vadd.f32 %v464_v47, %v208_v46  ;;  %v211_v55 = vld [vmem:[%s1599_s28 + $0x98] sm:$0xff] }
  0x36   : > { %964 = vst [vmem:[%s1620_s20 + $0x20] sm:$0xff] %v708_v16  ;;  %v466_v53 = vld [vmem:[%s1609_s5 + $0x90] sm:$0xff]  ;;  %v467_v56 = vld [vmem:[%s1609_s5 + $0x98] sm:$0xff]  ;;  %v721_v57 = vadd.f32 %v465_v50, %v209_v49  ;;  %v212_v58 = vld [vmem:[%s1599_s28 + $0xa0] sm:$0xff]  ;;  %p1446_p7 = pnand %p1445_p4, %p1441_p0 }
  0x37   : > { %965 = vst [vmem:[%s1620_s20 + $0x28] sm:$0xff] %v709_v17  ;;  %v468_v59 = vld [vmem:[%s1609_s5 + $0xa0] sm:$0xff]  ;;  %v722_v60 = vadd.f32 %v466_v53, %v210_v52  ;;  %v213_v61 = vld [vmem:[%s1599_s28 + $0xa8] sm:$0xff]  ;;  %v723_v63 = vadd.f32 %v467_v56, %v211_v55  ;;  %v214_v0 = vld [vmem:[%s1599_s28 + $0xb0] sm:$0xff] }
  0x38   : > { %966 = vst [vmem:[%s1620_s20 + $0x30] sm:$0xff] %v710_v21  ;;  %v469_v62 = vld [vmem:[%s1609_s5 + $0xa8] sm:$0xff]  ;;  %v470_v1 = vld [vmem:[%s1609_s5 + $0xb0] sm:$0xff]  ;;  %v724_v2 = vadd.f32 %v468_v59, %v212_v58  ;;  %v215_v3 = vld [vmem:[%s1599_s28 + $0xb8] sm:$0xff] }
  0x39   : > { %967 = vst [vmem:[%s1620_s20 + $0x38] sm:$0xff] %v711_v25  ;;  %v471_v4 = vld [vmem:[%s1609_s5 + $0xb8] sm:$0xff]  ;;  %v725_v5 = vadd.f32 %v469_v62, %v213_v61  ;;  %v216_v6 = vld [vmem:[%s1599_s28 + $0xc0] sm:$0xff]  ;;  %v726_v8 = vadd.f32 %v470_v1, %v214_v0  ;;  %v217_v9 = vld [vmem:[%s1599_s28 + $0xc8] sm:$0xff] }
  0x3a   : > { %968 = vst [vmem:[%s1620_s20 + $0x40] sm:$0xff] %v712_v29  ;;  %v472_v7 = vld [vmem:[%s1609_s5 + $0xc0] sm:$0xff]  ;;  %v473_v10 = vld [vmem:[%s1609_s5 + $0xc8] sm:$0xff]  ;;  %v727_v11 = vadd.f32 %v471_v4, %v215_v3  ;;  %v218_v12 = vld [vmem:[%s1599_s28 + $0xd0] sm:$0xff] }
  0x3b   : > { %969 = vst [vmem:[%s1620_s20 + $0x48] sm:$0xff] %v713_v33  ;;  %v474_v13 = vld [vmem:[%s1609_s5 + $0xd0] sm:$0xff]  ;;  %v728_v14 = vadd.f32 %v472_v7, %v216_v6  ;;  %v219_v15 = vld [vmem:[%s1599_s28 + $0xd8] sm:$0xff]  ;;  %v729_v17 = vadd.f32 %v473_v10, %v217_v9  ;;  %v220_v18 = vld [vmem:[%s1599_s28 + $0xe0] sm:$0xff] }
  0x3c   : > { %970 = vst [vmem:[%s1620_s20 + $0x50] sm:$0xff] %v714_v36  ;;  %v475_v16 = vld [vmem:[%s1609_s5 + $0xd8] sm:$0xff]  ;;  %v476_v19 = vld [vmem:[%s1609_s5 + $0xe0] sm:$0xff]  ;;  %v730_v20 = vadd.f32 %v474_v13, %v218_v12  ;;  %v221_v21 = vld [vmem:[%s1599_s28 + $0xe8] sm:$0xff] }
  0x3d   : > { %971 = vst [vmem:[%s1620_s20 + $0x58] sm:$0xff] %v715_v39  ;;  %v477_v22 = vld [vmem:[%s1609_s5 + $0xe8] sm:$0xff]  ;;  %v731_v23 = vadd.f32 %v475_v16, %v219_v15  ;;  %v222_v24 = vld [vmem:[%s1599_s28 + $0xf0] sm:$0xff]  ;;  %v732_v26 = vadd.f32 %v476_v19, %v220_v18  ;;  %v223_v27 = vld [vmem:[%s1599_s28 + $0xf8] sm:$0xff] }
  0x3e   : > { %972 = vst [vmem:[%s1620_s20 + $0x60] sm:$0xff] %v716_v42  ;;  %v478_v25 = vld [vmem:[%s1609_s5 + $0xf0] sm:$0xff]  ;;  %v479_v28 = vld [vmem:[%s1609_s5 + $0xf8] sm:$0xff]  ;;  %v733_v29 = vadd.f32 %v477_v22, %v221_v21  ;;  %v224_v30 = vld [vmem:[%s1599_s28 + $0x100] sm:$0xff] }
  0x3f   : > { %973 = vst [vmem:[%s1620_s20 + $0x68] sm:$0xff] %v717_v45  ;;  %v480_v31 = vld [vmem:[%s1609_s5 + $0x100] sm:$0xff]  ;;  %v734_v32 = vadd.f32 %v478_v25, %v222_v24  ;;  %v225_v33 = vld [vmem:[%s1599_s28 + $0x108] sm:$0xff]  ;;  %v735_v35 = vadd.f32 %v479_v28, %v223_v27  ;;  %v226_v36 = vld [vmem:[%s1599_s28 + $0x110] sm:$0xff] }
  0x40   : > { %974 = vst [vmem:[%s1620_s20 + $0x70] sm:$0xff] %v718_v48  ;;  %v481_v34 = vld [vmem:[%s1609_s5 + $0x108] sm:$0xff]  ;;  %v482_v37 = vld [vmem:[%s1609_s5 + $0x110] sm:$0xff]  ;;  %v736_v38 = vadd.f32 %v480_v31, %v224_v30  ;;  %v227_v39 = vld [vmem:[%s1599_s28 + $0x118] sm:$0xff] }
  0x41   : > { %975 = vst [vmem:[%s1620_s20 + $0x78] sm:$0xff] %v719_v51  ;;  %v483_v40 = vld [vmem:[%s1609_s5 + $0x118] sm:$0xff]  ;;  %v737_v41 = vadd.f32 %v481_v34, %v225_v33  ;;  %v228_v42 = vld [vmem:[%s1599_s28 + $0x120] sm:$0xff]  ;;  %v738_v44 = vadd.f32 %v482_v37, %v226_v36  ;;  %v229_v45 = vld [vmem:[%s1599_s28 + $0x128] sm:$0xff] }
  0x42   : > { %976 = vst [vmem:[%s1620_s20 + $0x80] sm:$0xff] %v720_v54  ;;  %v484_v43 = vld [vmem:[%s1609_s5 + $0x120] sm:$0xff]  ;;  %v485_v46 = vld [vmem:[%s1609_s5 + $0x128] sm:$0xff]  ;;  %v739_v47 = vadd.f32 %v483_v40, %v227_v39  ;;  %v230_v48 = vld [vmem:[%s1599_s28 + $0x130] sm:$0xff] }
  0x43   : > { %977 = vst [vmem:[%s1620_s20 + $0x88] sm:$0xff] %v721_v57  ;;  %v486_v49 = vld [vmem:[%s1609_s5 + $0x130] sm:$0xff]  ;;  %v740_v50 = vadd.f32 %v484_v43, %v228_v42  ;;  %v231_v51 = vld [vmem:[%s1599_s28 + $0x138] sm:$0xff]  ;;  %v741_v53 = vadd.f32 %v485_v46, %v229_v45  ;;  %v232_v54 = vld [vmem:[%s1599_s28 + $0x140] sm:$0xff] }
  0x44   : > { %978 = vst [vmem:[%s1620_s20 + $0x90] sm:$0xff] %v722_v60  ;;  %v487_v52 = vld [vmem:[%s1609_s5 + $0x138] sm:$0xff]  ;;  %v488_v55 = vld [vmem:[%s1609_s5 + $0x140] sm:$0xff]  ;;  %v742_v56 = vadd.f32 %v486_v49, %v230_v48  ;;  %v233_v57 = vld [vmem:[%s1599_s28 + $0x148] sm:$0xff] }
  0x45   : > { %979 = vst [vmem:[%s1620_s20 + $0x98] sm:$0xff] %v723_v63  ;;  %v489_v58 = vld [vmem:[%s1609_s5 + $0x148] sm:$0xff]  ;;  %v743_v59 = vadd.f32 %v487_v52, %v231_v51  ;;  %v234_v60 = vld [vmem:[%s1599_s28 + $0x150] sm:$0xff]  ;;  %v744_v62 = vadd.f32 %v488_v55, %v232_v54  ;;  %v235_v63 = vld [vmem:[%s1599_s28 + $0x158] sm:$0xff] }
  0x46   : > { %980 = vst [vmem:[%s1620_s20 + $0xa0] sm:$0xff] %v724_v2  ;;  %v490_v61 = vld [vmem:[%s1609_s5 + $0x150] sm:$0xff]  ;;  %v491_v0 = vld [vmem:[%s1609_s5 + $0x158] sm:$0xff]  ;;  %v745_v1 = vadd.f32 %v489_v58, %v233_v57  ;;  %v236_v2 = vld [vmem:[%s1599_s28 + $0x160] sm:$0xff] }
  0x47   : > { %981 = vst [vmem:[%s1620_s20 + $0xa8] sm:$0xff] %v725_v5  ;;  %v492_v3 = vld [vmem:[%s1609_s5 + $0x160] sm:$0xff]  ;;  %v746_v4 = vadd.f32 %v490_v61, %v234_v60  ;;  %v237_v5 = vld [vmem:[%s1599_s28 + $0x168] sm:$0xff]  ;;  %v747_v7 = vadd.f32 %v491_v0, %v235_v63  ;;  %v494_v9 = vld [vmem:[%s1609_s5 + $0x170] sm:$0xff] }
  0x48   : > { %982 = vst [vmem:[%s1620_s20 + $0xb0] sm:$0xff] %v726_v8  ;;  %v493_v6 = vld [vmem:[%s1609_s5 + $0x168] sm:$0xff]  ;;  %v238_v8 = vld [vmem:[%s1599_s28 + $0x170] sm:$0xff]  ;;  %v748_v10 = vadd.f32 %v492_v3, %v236_v2  ;;  %v495_v12 = vld [vmem:[%s1609_s5 + $0x178] sm:$0xff] }
  0x49   : > { %983 = vst [vmem:[%s1620_s20 + $0xb8] sm:$0xff] %v727_v11  ;;  %v239_v11 = vld [vmem:[%s1599_s28 + $0x178] sm:$0xff]  ;;  %v749_v13 = vadd.f32 %v493_v6, %v237_v5  ;;  %v496_v15 = vld [vmem:[%s1609_s5 + $0x180] sm:$0xff]  ;;  %v750_v16 = vadd.f32 %v494_v9, %v238_v8  ;;  %v497_v18 = vld [vmem:[%s1609_s5 + $0x188] sm:$0xff] }
  0x4a   : > { %984 = vst [vmem:[%s1620_s20 + $0xc0] sm:$0xff] %v728_v14  ;;  %v240_v14 = vld [vmem:[%s1599_s28 + $0x180] sm:$0xff]  ;;  %v751_v19 = vadd.f32 %v495_v12, %v239_v11  ;;  %v498_v21 = vld [vmem:[%s1609_s5 + $0x190] sm:$0xff]  ;;  %v499_v24 = vld [vmem:[%s1609_s5 + $0x198] sm:$0xff] }
  0x4b   : > { %985 = vst [vmem:[%s1620_s20 + $0xc8] sm:$0xff] %v729_v17  ;;  %v241_v17 = vld [vmem:[%s1599_s28 + $0x188] sm:$0xff]  ;;  %v752_v22 = vadd.f32 %v496_v15, %v240_v14  ;;  %v500_v27 = vld [vmem:[%s1609_s5 + $0x1a0] sm:$0xff]  ;;  %v502_v33 = vld [vmem:[%s1609_s5 + $0x1b0] sm:$0xff] }
  0x4c   : > { %986 = vst [vmem:[%s1620_s20 + $0xd0] sm:$0xff] %v730_v20  ;;  %v242_v20 = vld [vmem:[%s1599_s28 + $0x190] sm:$0xff]  ;;  %v753_v25 = vadd.f32 %v497_v18, %v241_v17  ;;  %v501_v30 = vld [vmem:[%s1609_s5 + $0x1a8] sm:$0xff]  ;;  %v503_v36 = vld [vmem:[%s1609_s5 + $0x1b8] sm:$0xff] }
  0x4d   : > { %987 = vst [vmem:[%s1620_s20 + $0xd8] sm:$0xff] %v731_v23  ;;  %v243_v23 = vld [vmem:[%s1599_s28 + $0x198] sm:$0xff]  ;;  %v754_v28 = vadd.f32 %v498_v21, %v242_v20  ;;  %v504_v39 = vld [vmem:[%s1609_s5 + $0x1c0] sm:$0xff]  ;;  %v505_v42 = vld [vmem:[%s1609_s5 + $0x1c8] sm:$0xff] }
  0x4e   : > { %988 = vst [vmem:[%s1620_s20 + $0xe0] sm:$0xff] %v732_v26  ;;  %v244_v26 = vld [vmem:[%s1599_s28 + $0x1a0] sm:$0xff]  ;;  %v755_v31 = vadd.f32 %v499_v24, %v243_v23  ;;  %v506_v45 = vld [vmem:[%s1609_s5 + $0x1d0] sm:$0xff]  ;;  %v507_v48 = vld [vmem:[%s1609_s5 + $0x1d8] sm:$0xff] }
  0x4f   : > { %989 = vst [vmem:[%s1620_s20 + $0xe8] sm:$0xff] %v733_v29  ;;  %v245_v29 = vld [vmem:[%s1599_s28 + $0x1a8] sm:$0xff]  ;;  %v756_v34 = vadd.f32 %v500_v27, %v244_v26  ;;  %v508_v51 = vld [vmem:[%s1609_s5 + $0x1e0] sm:$0xff]  ;;  %v510_v57 = vld [vmem:[%s1609_s5 + $0x1f0] sm:$0xff] }
  0x50   : > { %990 = vst [vmem:[%s1620_s20 + $0xf0] sm:$0xff] %v734_v32  ;;  %v246_v32 = vld [vmem:[%s1599_s28 + $0x1b0] sm:$0xff]  ;;  %v757_v37 = vadd.f32 %v501_v30, %v245_v29  ;;  %v509_v54 = vld [vmem:[%s1609_s5 + $0x1e8] sm:$0xff]  ;;  %v511_v60 = vld [vmem:[%s1609_s5 + $0x1f8] sm:$0xff] }
  0x51   : > { %991 = vst [vmem:[%s1620_s20 + $0xf8] sm:$0xff] %v735_v35  ;;  %v247_v35 = vld [vmem:[%s1599_s28 + $0x1b8] sm:$0xff]  ;;  %v758_v40 = vadd.f32 %v502_v33, %v246_v32  ;;  %v512_v63 = vld [vmem:[%s1609_s5 + $0x200] sm:$0xff]  ;;  %v513_v2 = vld [vmem:[%s1609_s5 + $0x208] sm:$0xff] }
  0x52   : > { %992 = vst [vmem:[%s1620_s20 + $0x100] sm:$0xff] %v736_v38  ;;  %v248_v38 = vld [vmem:[%s1599_s28 + $0x1c0] sm:$0xff]  ;;  %v759_v43 = vadd.f32 %v503_v36, %v247_v35  ;;  %v514_v5 = vld [vmem:[%s1609_s5 + $0x210] sm:$0xff]  ;;  %v515_v8 = vld [vmem:[%s1609_s5 + $0x218] sm:$0xff] }
  0x53   : > { %993 = vst [vmem:[%s1620_s20 + $0x108] sm:$0xff] %v737_v41  ;;  %v249_v41 = vld [vmem:[%s1599_s28 + $0x1c8] sm:$0xff]  ;;  %v760_v46 = vadd.f32 %v504_v39, %v248_v38  ;;  %v516_v11 = vld [vmem:[%s1609_s5 + $0x220] sm:$0xff]  ;;  %v518_v17 = vld [vmem:[%s1609_s5 + $0x230] sm:$0xff] }
  0x54   : > { %994 = vst [vmem:[%s1620_s20 + $0x110] sm:$0xff] %v738_v44  ;;  %v250_v44 = vld [vmem:[%s1599_s28 + $0x1d0] sm:$0xff]  ;;  %v761_v49 = vadd.f32 %v505_v42, %v249_v41  ;;  %v517_v14 = vld [vmem:[%s1609_s5 + $0x228] sm:$0xff]  ;;  %v519_v20 = vld [vmem:[%s1609_s5 + $0x238] sm:$0xff] }
  0x55   : > { %995 = vst [vmem:[%s1620_s20 + $0x118] sm:$0xff] %v739_v47  ;;  %v251_v47 = vld [vmem:[%s1599_s28 + $0x1d8] sm:$0xff]  ;;  %v762_v52 = vadd.f32 %v506_v45, %v250_v44  ;;  %v520_v23 = vld [vmem:[%s1609_s5 + $0x240] sm:$0xff]  ;;  %v521_v26 = vld [vmem:[%s1609_s5 + $0x248] sm:$0xff] }
  0x56   : > { %996 = vst [vmem:[%s1620_s20 + $0x120] sm:$0xff] %v740_v50  ;;  %v252_v50 = vld [vmem:[%s1599_s28 + $0x1e0] sm:$0xff]  ;;  %v763_v55 = vadd.f32 %v507_v48, %v251_v47  ;;  %v522_v29 = vld [vmem:[%s1609_s5 + $0x250] sm:$0xff]  ;;  %v523_v32 = vld [vmem:[%s1609_s5 + $0x258] sm:$0xff] }
  0x57   : > { %997 = vst [vmem:[%s1620_s20 + $0x128] sm:$0xff] %v741_v53  ;;  %v253_v53 = vld [vmem:[%s1599_s28 + $0x1e8] sm:$0xff]  ;;  %v764_v58 = vadd.f32 %v508_v51, %v252_v50  ;;  %v524_v35 = vld [vmem:[%s1609_s5 + $0x260] sm:$0xff]  ;;  %v526_v41 = vld [vmem:[%s1609_s5 + $0x270] sm:$0xff] }
  0x58   : > { %998 = vst [vmem:[%s1620_s20 + $0x130] sm:$0xff] %v742_v56  ;;  %v254_v56 = vld [vmem:[%s1599_s28 + $0x1f0] sm:$0xff]  ;;  %v765_v61 = vadd.f32 %v509_v54, %v253_v53  ;;  %v525_v38 = vld [vmem:[%s1609_s5 + $0x268] sm:$0xff]  ;;  %v527_v44 = vld [vmem:[%s1609_s5 + $0x278] sm:$0xff] }
  0x59   : > { %999 = vst [vmem:[%s1620_s20 + $0x138] sm:$0xff] %v743_v59  ;;  %v255_v59 = vld [vmem:[%s1599_s28 + $0x1f8] sm:$0xff]  ;;  %v766_v0 = vadd.f32 %v510_v57, %v254_v56  ;;  %v528_v47 = vld [vmem:[%s1609_s5 + $0x280] sm:$0xff]  ;;  %v529_v50 = vld [vmem:[%s1609_s5 + $0x288] sm:$0xff] }
  0x5a   : > { %1000 = vst [vmem:[%s1620_s20 + $0x140] sm:$0xff] %v744_v62  ;;  %v256_v62 = vld [vmem:[%s1599_s28 + $0x200] sm:$0xff]  ;;  %v767_v3 = vadd.f32 %v511_v60, %v255_v59  ;;  %v530_v53 = vld [vmem:[%s1609_s5 + $0x290] sm:$0xff]  ;;  %v531_v56 = vld [vmem:[%s1609_s5 + $0x298] sm:$0xff] }
  0x5b   : > { %1001 = vst [vmem:[%s1620_s20 + $0x148] sm:$0xff] %v745_v1  ;;  %v257_v1 = vld [vmem:[%s1599_s28 + $0x208] sm:$0xff]  ;;  %v768_v6 = vadd.f32 %v512_v63, %v256_v62  ;;  %v532_v59 = vld [vmem:[%s1609_s5 + $0x2a0] sm:$0xff] }
  0x5c   : > { %1002 = vst [vmem:[%s1620_s20 + $0x150] sm:$0xff] %v746_v4  ;;  %v258_v4 = vld [vmem:[%s1599_s28 + $0x210] sm:$0xff]  ;;  %v769_v9 = vadd.f32 %v513_v2, %v257_v1  ;;  %v533_v62 = vld [vmem:[%s1609_s5 + $0x2a8] sm:$0xff] }
  0x5d   : > { %1003 = vst [vmem:[%s1620_s20 + $0x158] sm:$0xff] %v747_v7  ;;  %v259_v7 = vld [vmem:[%s1599_s28 + $0x218] sm:$0xff]  ;;  %v770_v12 = vadd.f32 %v514_v5, %v258_v4  ;;  %v534_v1 = vld [vmem:[%s1609_s5 + $0x2b0] sm:$0xff] }
  0x5e   : > { %1004 = vst [vmem:[%s1620_s20 + $0x160] sm:$0xff] %v748_v10  ;;  %v260_v10 = vld [vmem:[%s1599_s28 + $0x220] sm:$0xff]  ;;  %v771_v15 = vadd.f32 %v515_v8, %v259_v7  ;;  %v535_v4 = vld [vmem:[%s1609_s5 + $0x2b8] sm:$0xff] }
  0x5f   : > { %1005 = vst [vmem:[%s1620_s20 + $0x168] sm:$0xff] %v749_v13  ;;  %v261_v13 = vld [vmem:[%s1599_s28 + $0x228] sm:$0xff]  ;;  %v772_v18 = vadd.f32 %v516_v11, %v260_v10  ;;  %v536_v7 = vld [vmem:[%s1609_s5 + $0x2c0] sm:$0xff] }
  0x60   : > { %1006 = vst [vmem:[%s1620_s20 + $0x170] sm:$0xff] %v750_v16  ;;  %v262_v16 = vld [vmem:[%s1599_s28 + $0x230] sm:$0xff]  ;;  %v773_v21 = vadd.f32 %v517_v14, %v261_v13  ;;  %v537_v10 = vld [vmem:[%s1609_s5 + $0x2c8] sm:$0xff] }
  0x61   : > { %1007 = vst [vmem:[%s1620_s20 + $0x178] sm:$0xff] %v751_v19  ;;  %v263_v19 = vld [vmem:[%s1599_s28 + $0x238] sm:$0xff]  ;;  %v774_v24 = vadd.f32 %v518_v17, %v262_v16  ;;  %v538_v13 = vld [vmem:[%s1609_s5 + $0x2d0] sm:$0xff] }
  0x62   : > { %1008 = vst [vmem:[%s1620_s20 + $0x180] sm:$0xff] %v752_v22  ;;  %v264_v22 = vld [vmem:[%s1599_s28 + $0x240] sm:$0xff]  ;;  %v775_v27 = vadd.f32 %v519_v20, %v263_v19  ;;  %v539_v16 = vld [vmem:[%s1609_s5 + $0x2d8] sm:$0xff] }
  0x63   : > { %1009 = vst [vmem:[%s1620_s20 + $0x188] sm:$0xff] %v753_v25  ;;  %v265_v25 = vld [vmem:[%s1599_s28 + $0x248] sm:$0xff]  ;;  %v776_v30 = vadd.f32 %v520_v23, %v264_v22  ;;  %v540_v19 = vld [vmem:[%s1609_s5 + $0x2e0] sm:$0xff] }
  0x64   : > { %1010 = vst [vmem:[%s1620_s20 + $0x190] sm:$0xff] %v754_v28  ;;  %v266_v28 = vld [vmem:[%s1599_s28 + $0x250] sm:$0xff]  ;;  %v777_v33 = vadd.f32 %v521_v26, %v265_v25  ;;  %v541_v22 = vld [vmem:[%s1609_s5 + $0x2e8] sm:$0xff] }
  0x65   : > { %1011 = vst [vmem:[%s1620_s20 + $0x198] sm:$0xff] %v755_v31  ;;  %v267_v31 = vld [vmem:[%s1599_s28 + $0x258] sm:$0xff]  ;;  %v778_v36 = vadd.f32 %v522_v29, %v266_v28  ;;  %v542_v25 = vld [vmem:[%s1609_s5 + $0x2f0] sm:$0xff] }
  0x66   : > { %1012 = vst [vmem:[%s1620_s20 + $0x1a0] sm:$0xff] %v756_v34  ;;  %v268_v34 = vld [vmem:[%s1599_s28 + $0x260] sm:$0xff]  ;;  %v779_v39 = vadd.f32 %v523_v32, %v267_v31  ;;  %v543_v28 = vld [vmem:[%s1609_s5 + $0x2f8] sm:$0xff] }
  0x67   : > { %1013 = vst [vmem:[%s1620_s20 + $0x1a8] sm:$0xff] %v757_v37  ;;  %v269_v37 = vld [vmem:[%s1599_s28 + $0x268] sm:$0xff]  ;;  %v780_v42 = vadd.f32 %v524_v35, %v268_v34  ;;  %v544_v31 = vld [vmem:[%s1609_s5 + $0x300] sm:$0xff] }
  0x68   : > { %1014 = vst [vmem:[%s1620_s20 + $0x1b0] sm:$0xff] %v758_v40  ;;  %v270_v40 = vld [vmem:[%s1599_s28 + $0x270] sm:$0xff]  ;;  %v781_v45 = vadd.f32 %v525_v38, %v269_v37  ;;  %v545_v34 = vld [vmem:[%s1609_s5 + $0x308] sm:$0xff] }
  0x69   : > { %1015 = vst [vmem:[%s1620_s20 + $0x1b8] sm:$0xff] %v759_v43  ;;  %v271_v43 = vld [vmem:[%s1599_s28 + $0x278] sm:$0xff]  ;;  %v782_v48 = vadd.f32 %v526_v41, %v270_v40  ;;  %v546_v37 = vld [vmem:[%s1609_s5 + $0x310] sm:$0xff] }
  0x6a   : > { %1016 = vst [vmem:[%s1620_s20 + $0x1c0] sm:$0xff] %v760_v46  ;;  %v272_v46 = vld [vmem:[%s1599_s28 + $0x280] sm:$0xff]  ;;  %v783_v51 = vadd.f32 %v527_v44, %v271_v43  ;;  %v547_v40 = vld [vmem:[%s1609_s5 + $0x318] sm:$0xff] }
  0x6b   : > { %1017 = vst [vmem:[%s1620_s20 + $0x1c8] sm:$0xff] %v761_v49  ;;  %v273_v49 = vld [vmem:[%s1599_s28 + $0x288] sm:$0xff]  ;;  %v784_v54 = vadd.f32 %v528_v47, %v272_v46  ;;  %v548_v43 = vld [vmem:[%s1609_s5 + $0x320] sm:$0xff] }
  0x6c   : > { %1018 = vst [vmem:[%s1620_s20 + $0x1d0] sm:$0xff] %v762_v52  ;;  %v274_v52 = vld [vmem:[%s1599_s28 + $0x290] sm:$0xff]  ;;  %v785_v57 = vadd.f32 %v529_v50, %v273_v49  ;;  %v549_v46 = vld [vmem:[%s1609_s5 + $0x328] sm:$0xff] }
  0x6d   : > { %1019 = vst [vmem:[%s1620_s20 + $0x1d8] sm:$0xff] %v763_v55  ;;  %v275_v55 = vld [vmem:[%s1599_s28 + $0x298] sm:$0xff]  ;;  %v786_v60 = vadd.f32 %v530_v53, %v274_v52  ;;  %v550_v49 = vld [vmem:[%s1609_s5 + $0x330] sm:$0xff] }
  0x6e   : > { %1020 = vst [vmem:[%s1620_s20 + $0x1e0] sm:$0xff] %v764_v58  ;;  %v276_v58 = vld [vmem:[%s1599_s28 + $0x2a0] sm:$0xff]  ;;  %v787_v63 = vadd.f32 %v531_v56, %v275_v55  ;;  %v551_v52 = vld [vmem:[%s1609_s5 + $0x338] sm:$0xff] }
  0x6f   : > { %1021 = vst [vmem:[%s1620_s20 + $0x1e8] sm:$0xff] %v765_v61  ;;  %v277_v61 = vld [vmem:[%s1599_s28 + $0x2a8] sm:$0xff]  ;;  %v788_v2 = vadd.f32 %v532_v59, %v276_v58  ;;  %v552_v55 = vld [vmem:[%s1609_s5 + $0x340] sm:$0xff] }
  0x70   : > { %1022 = vst [vmem:[%s1620_s20 + $0x1f0] sm:$0xff] %v766_v0  ;;  %v278_v0 = vld [vmem:[%s1599_s28 + $0x2b0] sm:$0xff]  ;;  %v789_v5 = vadd.f32 %v533_v62, %v277_v61  ;;  %v553_v58 = vld [vmem:[%s1609_s5 + $0x348] sm:$0xff] }
  0x71   : > { %1023 = vst [vmem:[%s1620_s20 + $0x1f8] sm:$0xff] %v767_v3  ;;  %v279_v3 = vld [vmem:[%s1599_s28 + $0x2b8] sm:$0xff]  ;;  %v790_v8 = vadd.f32 %v534_v1, %v278_v0  ;;  %v554_v61 = vld [vmem:[%s1609_s5 + $0x350] sm:$0xff] }
  0x72   : > { %1024 = vst [vmem:[%s1620_s20 + $0x200] sm:$0xff] %v768_v6  ;;  %v280_v6 = vld [vmem:[%s1599_s28 + $0x2c0] sm:$0xff]  ;;  %v791_v11 = vadd.f32 %v535_v4, %v279_v3  ;;  %v555_v0 = vld [vmem:[%s1609_s5 + $0x358] sm:$0xff] }
  0x73   : > { %1025 = vst [vmem:[%s1620_s20 + $0x208] sm:$0xff] %v769_v9  ;;  %v281_v9 = vld [vmem:[%s1599_s28 + $0x2c8] sm:$0xff]  ;;  %v792_v14 = vadd.f32 %v536_v7, %v280_v6  ;;  %v556_v3 = vld [vmem:[%s1609_s5 + $0x360] sm:$0xff] }
  0x74   : > { %1026 = vst [vmem:[%s1620_s20 + $0x210] sm:$0xff] %v770_v12  ;;  %v282_v12 = vld [vmem:[%s1599_s28 + $0x2d0] sm:$0xff]  ;;  %v793_v17 = vadd.f32 %v537_v10, %v281_v9  ;;  %v557_v6 = vld [vmem:[%s1609_s5 + $0x368] sm:$0xff] }
  0x75   : > { %1027 = vst [vmem:[%s1620_s20 + $0x218] sm:$0xff] %v771_v15  ;;  %v283_v15 = vld [vmem:[%s1599_s28 + $0x2d8] sm:$0xff]  ;;  %v794_v20 = vadd.f32 %v538_v13, %v282_v12  ;;  %v558_v9 = vld [vmem:[%s1609_s5 + $0x370] sm:$0xff] }
  0x76   : > { %1028 = vst [vmem:[%s1620_s20 + $0x220] sm:$0xff] %v772_v18  ;;  %v284_v18 = vld [vmem:[%s1599_s28 + $0x2e0] sm:$0xff]  ;;  %v795_v23 = vadd.f32 %v539_v16, %v283_v15  ;;  %v559_v12 = vld [vmem:[%s1609_s5 + $0x378] sm:$0xff] }
  0x77   : > { %1029 = vst [vmem:[%s1620_s20 + $0x228] sm:$0xff] %v773_v21  ;;  %v285_v21 = vld [vmem:[%s1599_s28 + $0x2e8] sm:$0xff]  ;;  %v796_v26 = vadd.f32 %v540_v19, %v284_v18  ;;  %v560_v15 = vld [vmem:[%s1609_s5 + $0x380] sm:$0xff] }
  0x78   : > { %1030 = vst [vmem:[%s1620_s20 + $0x230] sm:$0xff] %v774_v24  ;;  %v286_v24 = vld [vmem:[%s1599_s28 + $0x2f0] sm:$0xff]  ;;  %v797_v29 = vadd.f32 %v541_v22, %v285_v21  ;;  %v561_v18 = vld [vmem:[%s1609_s5 + $0x388] sm:$0xff] }
  0x79   : > { %1031 = vst [vmem:[%s1620_s20 + $0x238] sm:$0xff] %v775_v27  ;;  %v287_v27 = vld [vmem:[%s1599_s28 + $0x2f8] sm:$0xff]  ;;  %v798_v32 = vadd.f32 %v542_v25, %v286_v24  ;;  %v562_v21 = vld [vmem:[%s1609_s5 + $0x390] sm:$0xff] }
  0x7a   : > { %1032 = vst [vmem:[%s1620_s20 + $0x240] sm:$0xff] %v776_v30  ;;  %v288_v30 = vld [vmem:[%s1599_s28 + $0x300] sm:$0xff]  ;;  %v799_v35 = vadd.f32 %v543_v28, %v287_v27  ;;  %v563_v24 = vld [vmem:[%s1609_s5 + $0x398] sm:$0xff] }
  0x7b   : > { %1033 = vst [vmem:[%s1620_s20 + $0x248] sm:$0xff] %v777_v33  ;;  %v289_v33 = vld [vmem:[%s1599_s28 + $0x308] sm:$0xff]  ;;  %v800_v38 = vadd.f32 %v544_v31, %v288_v30  ;;  %v564_v27 = vld [vmem:[%s1609_s5 + $0x3a0] sm:$0xff] }
  0x7c   : > { %1034 = vst [vmem:[%s1620_s20 + $0x250] sm:$0xff] %v778_v36  ;;  %v290_v36 = vld [vmem:[%s1599_s28 + $0x310] sm:$0xff]  ;;  %v801_v41 = vadd.f32 %v545_v34, %v289_v33  ;;  %v565_v30 = vld [vmem:[%s1609_s5 + $0x3a8] sm:$0xff] }
  0x7d   : > { %1035 = vst [vmem:[%s1620_s20 + $0x258] sm:$0xff] %v779_v39  ;;  %v291_v39 = vld [vmem:[%s1599_s28 + $0x318] sm:$0xff]  ;;  %v802_v44 = vadd.f32 %v546_v37, %v290_v36  ;;  %v566_v33 = vld [vmem:[%s1609_s5 + $0x3b0] sm:$0xff] }
  0x7e   : > { %1036 = vst [vmem:[%s1620_s20 + $0x260] sm:$0xff] %v780_v42  ;;  %v292_v42 = vld [vmem:[%s1599_s28 + $0x320] sm:$0xff]  ;;  %v803_v47 = vadd.f32 %v547_v40, %v291_v39  ;;  %v567_v36 = vld [vmem:[%s1609_s5 + $0x3b8] sm:$0xff] }
  0x7f   : > { %1037 = vst [vmem:[%s1620_s20 + $0x268] sm:$0xff] %v781_v45  ;;  %v293_v45 = vld [vmem:[%s1599_s28 + $0x328] sm:$0xff]  ;;  %v804_v50 = vadd.f32 %v548_v43, %v292_v42  ;;  %v568_v39 = vld [vmem:[%s1609_s5 + $0x3c0] sm:$0xff] }
  0x80   : > { %1038 = vst [vmem:[%s1620_s20 + $0x270] sm:$0xff] %v782_v48  ;;  %v294_v48 = vld [vmem:[%s1599_s28 + $0x330] sm:$0xff]  ;;  %v805_v53 = vadd.f32 %v549_v46, %v293_v45  ;;  %v569_v42 = vld [vmem:[%s1609_s5 + $0x3c8] sm:$0xff] }
  0x81   : > { %1039 = vst [vmem:[%s1620_s20 + $0x278] sm:$0xff] %v783_v51  ;;  %v295_v51 = vld [vmem:[%s1599_s28 + $0x338] sm:$0xff]  ;;  %v806_v56 = vadd.f32 %v550_v49, %v294_v48  ;;  %v570_v45 = vld [vmem:[%s1609_s5 + $0x3d0] sm:$0xff] }
  0x82   : > { %1040 = vst [vmem:[%s1620_s20 + $0x280] sm:$0xff] %v784_v54  ;;  %v296_v54 = vld [vmem:[%s1599_s28 + $0x340] sm:$0xff]  ;;  %v807_v59 = vadd.f32 %v551_v52, %v295_v51  ;;  %v571_v48 = vld [vmem:[%s1609_s5 + $0x3d8] sm:$0xff] }
  0x83   : > { %1041 = vst [vmem:[%s1620_s20 + $0x288] sm:$0xff] %v785_v57  ;;  %v297_v57 = vld [vmem:[%s1599_s28 + $0x348] sm:$0xff]  ;;  %v808_v62 = vadd.f32 %v552_v55, %v296_v54  ;;  %v572_v51 = vld [vmem:[%s1609_s5 + $0x3e0] sm:$0xff] }
  0x84   : > { %1042 = vst [vmem:[%s1620_s20 + $0x290] sm:$0xff] %v786_v60  ;;  %v298_v60 = vld [vmem:[%s1599_s28 + $0x350] sm:$0xff]  ;;  %v809_v1 = vadd.f32 %v553_v58, %v297_v57  ;;  %v573_v54 = vld [vmem:[%s1609_s5 + $0x3e8] sm:$0xff] }
  0x85   : > { %1043 = vst [vmem:[%s1620_s20 + $0x298] sm:$0xff] %v787_v63  ;;  %v299_v63 = vld [vmem:[%s1599_s28 + $0x358] sm:$0xff]  ;;  %v810_v4 = vadd.f32 %v554_v61, %v298_v60  ;;  %v574_v57 = vld [vmem:[%s1609_s5 + $0x3f0] sm:$0xff] }
  0x86   : > { %1044 = vst [vmem:[%s1620_s20 + $0x2a0] sm:$0xff] %v788_v2  ;;  %v300_v2 = vld [vmem:[%s1599_s28 + $0x360] sm:$0xff]  ;;  %v811_v7 = vadd.f32 %v555_v0, %v299_v63  ;;  %v575_v60 = vld [vmem:[%s1609_s5 + $0x3f8] sm:$0xff] }
  0x87   : > { %1045 = vst [vmem:[%s1620_s20 + $0x2a8] sm:$0xff] %v789_v5  ;;  %v301_v5 = vld [vmem:[%s1599_s28 + $0x368] sm:$0xff]  ;;  %v812_v10 = vadd.f32 %v556_v3, %v300_v2  ;;  %v576_v63 = vld [vmem:[%s1609_s5 + $0x400] sm:$0xff] }
  0x88   : > { %1046 = vst [vmem:[%s1620_s20 + $0x2b0] sm:$0xff] %v790_v8  ;;  %v302_v8 = vld [vmem:[%s1599_s28 + $0x370] sm:$0xff]  ;;  %v813_v13 = vadd.f32 %v557_v6, %v301_v5  ;;  %v577_v2 = vld [vmem:[%s1609_s5 + $0x408] sm:$0xff] }
  0x89   : > { %1047 = vst [vmem:[%s1620_s20 + $0x2b8] sm:$0xff] %v791_v11  ;;  %v303_v11 = vld [vmem:[%s1599_s28 + $0x378] sm:$0xff]  ;;  %v814_v16 = vadd.f32 %v558_v9, %v302_v8  ;;  %v578_v5 = vld [vmem:[%s1609_s5 + $0x410] sm:$0xff] }
  0x8a   : > { %1048 = vst [vmem:[%s1620_s20 + $0x2c0] sm:$0xff] %v792_v14  ;;  %v304_v14 = vld [vmem:[%s1599_s28 + $0x380] sm:$0xff]  ;;  %v815_v19 = vadd.f32 %v559_v12, %v303_v11  ;;  %v579_v8 = vld [vmem:[%s1609_s5 + $0x418] sm:$0xff] }
  0x8b   : > { %1049 = vst [vmem:[%s1620_s20 + $0x2c8] sm:$0xff] %v793_v17  ;;  %v305_v17 = vld [vmem:[%s1599_s28 + $0x388] sm:$0xff]  ;;  %v816_v22 = vadd.f32 %v560_v15, %v304_v14  ;;  %v580_v11 = vld [vmem:[%s1609_s5 + $0x420] sm:$0xff] }
  0x8c   : > { %1050 = vst [vmem:[%s1620_s20 + $0x2d0] sm:$0xff] %v794_v20  ;;  %v306_v20 = vld [vmem:[%s1599_s28 + $0x390] sm:$0xff]  ;;  %v817_v25 = vadd.f32 %v561_v18, %v305_v17  ;;  %v581_v14 = vld [vmem:[%s1609_s5 + $0x428] sm:$0xff] }
  0x8d   : > { %1051 = vst [vmem:[%s1620_s20 + $0x2d8] sm:$0xff] %v795_v23  ;;  %v307_v23 = vld [vmem:[%s1599_s28 + $0x398] sm:$0xff]  ;;  %v818_v28 = vadd.f32 %v562_v21, %v306_v20  ;;  %v582_v17 = vld [vmem:[%s1609_s5 + $0x430] sm:$0xff] }
  0x8e   : > { %1052 = vst [vmem:[%s1620_s20 + $0x2e0] sm:$0xff] %v796_v26  ;;  %v308_v26 = vld [vmem:[%s1599_s28 + $0x3a0] sm:$0xff]  ;;  %v819_v31 = vadd.f32 %v563_v24, %v307_v23  ;;  %v583_v20 = vld [vmem:[%s1609_s5 + $0x438] sm:$0xff] }
  0x8f   : > { %1053 = vst [vmem:[%s1620_s20 + $0x2e8] sm:$0xff] %v797_v29  ;;  %v309_v29 = vld [vmem:[%s1599_s28 + $0x3a8] sm:$0xff]  ;;  %v820_v34 = vadd.f32 %v564_v27, %v308_v26  ;;  %v584_v23 = vld [vmem:[%s1609_s5 + $0x440] sm:$0xff] }
  0x90   : > { %1054 = vst [vmem:[%s1620_s20 + $0x2f0] sm:$0xff] %v798_v32  ;;  %v310_v32 = vld [vmem:[%s1599_s28 + $0x3b0] sm:$0xff]  ;;  %v821_v37 = vadd.f32 %v565_v30, %v309_v29  ;;  %v585_v26 = vld [vmem:[%s1609_s5 + $0x448] sm:$0xff] }
  0x91   : > { %1055 = vst [vmem:[%s1620_s20 + $0x2f8] sm:$0xff] %v799_v35  ;;  %v311_v35 = vld [vmem:[%s1599_s28 + $0x3b8] sm:$0xff]  ;;  %v822_v40 = vadd.f32 %v566_v33, %v310_v32  ;;  %v586_v29 = vld [vmem:[%s1609_s5 + $0x450] sm:$0xff] }
  0x92   : > { %1056 = vst [vmem:[%s1620_s20 + $0x300] sm:$0xff] %v800_v38  ;;  %v312_v38 = vld [vmem:[%s1599_s28 + $0x3c0] sm:$0xff]  ;;  %v823_v43 = vadd.f32 %v567_v36, %v311_v35  ;;  %v587_v32 = vld [vmem:[%s1609_s5 + $0x458] sm:$0xff] }
  0x93   : > { %1057 = vst [vmem:[%s1620_s20 + $0x308] sm:$0xff] %v801_v41  ;;  %v313_v41 = vld [vmem:[%s1599_s28 + $0x3c8] sm:$0xff]  ;;  %v824_v46 = vadd.f32 %v568_v39, %v312_v38  ;;  %v588_v35 = vld [vmem:[%s1609_s5 + $0x460] sm:$0xff] }
  0x94   : > { %1058 = vst [vmem:[%s1620_s20 + $0x310] sm:$0xff] %v802_v44  ;;  %v314_v44 = vld [vmem:[%s1599_s28 + $0x3d0] sm:$0xff]  ;;  %v825_v49 = vadd.f32 %v569_v42, %v313_v41  ;;  %v589_v38 = vld [vmem:[%s1609_s5 + $0x468] sm:$0xff] }
  0x95   : > { %1059 = vst [vmem:[%s1620_s20 + $0x318] sm:$0xff] %v803_v47  ;;  %v315_v47 = vld [vmem:[%s1599_s28 + $0x3d8] sm:$0xff]  ;;  %v826_v52 = vadd.f32 %v570_v45, %v314_v44  ;;  %v590_v41 = vld [vmem:[%s1609_s5 + $0x470] sm:$0xff] }
  0x96   : > { %1060 = vst [vmem:[%s1620_s20 + $0x320] sm:$0xff] %v804_v50  ;;  %v316_v50 = vld [vmem:[%s1599_s28 + $0x3e0] sm:$0xff]  ;;  %v827_v55 = vadd.f32 %v571_v48, %v315_v47  ;;  %v591_v44 = vld [vmem:[%s1609_s5 + $0x478] sm:$0xff] }
  0x97   : > { %1061 = vst [vmem:[%s1620_s20 + $0x328] sm:$0xff] %v805_v53  ;;  %v317_v53 = vld [vmem:[%s1599_s28 + $0x3e8] sm:$0xff]  ;;  %v828_v58 = vadd.f32 %v572_v51, %v316_v50  ;;  %v592_v47 = vld [vmem:[%s1609_s5 + $0x480] sm:$0xff] }
  0x98   : > { %1062 = vst [vmem:[%s1620_s20 + $0x330] sm:$0xff] %v806_v56  ;;  %v318_v56 = vld [vmem:[%s1599_s28 + $0x3f0] sm:$0xff]  ;;  %v829_v61 = vadd.f32 %v573_v54, %v317_v53  ;;  %v593_v50 = vld [vmem:[%s1609_s5 + $0x488] sm:$0xff] }
  0x99   : > { %1063 = vst [vmem:[%s1620_s20 + $0x338] sm:$0xff] %v807_v59  ;;  %v319_v59 = vld [vmem:[%s1599_s28 + $0x3f8] sm:$0xff]  ;;  %v830_v0 = vadd.f32 %v574_v57, %v318_v56  ;;  %v594_v53 = vld [vmem:[%s1609_s5 + $0x490] sm:$0xff] }
  0x9a   : > { %1064 = vst [vmem:[%s1620_s20 + $0x340] sm:$0xff] %v808_v62  ;;  %v320_v62 = vld [vmem:[%s1599_s28 + $0x400] sm:$0xff]  ;;  %v831_v3 = vadd.f32 %v575_v60, %v319_v59  ;;  %v595_v56 = vld [vmem:[%s1609_s5 + $0x498] sm:$0xff] }
  0x9b   : > { %1065 = vst [vmem:[%s1620_s20 + $0x348] sm:$0xff] %v809_v1  ;;  %v321_v1 = vld [vmem:[%s1599_s28 + $0x408] sm:$0xff]  ;;  %v832_v6 = vadd.f32 %v576_v63, %v320_v62  ;;  %v596_v59 = vld [vmem:[%s1609_s5 + $0x4a0] sm:$0xff] }
  0x9c   : > { %1066 = vst [vmem:[%s1620_s20 + $0x350] sm:$0xff] %v810_v4  ;;  %v322_v4 = vld [vmem:[%s1599_s28 + $0x410] sm:$0xff]  ;;  %v833_v9 = vadd.f32 %v577_v2, %v321_v1  ;;  %v597_v62 = vld [vmem:[%s1609_s5 + $0x4a8] sm:$0xff] }
  0x9d   : > { %1067 = vst [vmem:[%s1620_s20 + $0x358] sm:$0xff] %v811_v7  ;;  %v323_v7 = vld [vmem:[%s1599_s28 + $0x418] sm:$0xff]  ;;  %v834_v12 = vadd.f32 %v578_v5, %v322_v4  ;;  %v598_v1 = vld [vmem:[%s1609_s5 + $0x4b0] sm:$0xff] }
  0x9e   : > { %1068 = vst [vmem:[%s1620_s20 + $0x360] sm:$0xff] %v812_v10  ;;  %v324_v10 = vld [vmem:[%s1599_s28 + $0x420] sm:$0xff]  ;;  %v835_v15 = vadd.f32 %v579_v8, %v323_v7  ;;  %v599_v4 = vld [vmem:[%s1609_s5 + $0x4b8] sm:$0xff] }
  0x9f   : > { %1069 = vst [vmem:[%s1620_s20 + $0x368] sm:$0xff] %v813_v13  ;;  %v325_v13 = vld [vmem:[%s1599_s28 + $0x428] sm:$0xff]  ;;  %v836_v18 = vadd.f32 %v580_v11, %v324_v10  ;;  %v600_v7 = vld [vmem:[%s1609_s5 + $0x4c0] sm:$0xff] }
  0xa0   : > { %1070 = vst [vmem:[%s1620_s20 + $0x370] sm:$0xff] %v814_v16  ;;  %v326_v16 = vld [vmem:[%s1599_s28 + $0x430] sm:$0xff]  ;;  %v837_v21 = vadd.f32 %v581_v14, %v325_v13  ;;  %v601_v10 = vld [vmem:[%s1609_s5 + $0x4c8] sm:$0xff] }
  0xa1   : > { %1071 = vst [vmem:[%s1620_s20 + $0x378] sm:$0xff] %v815_v19  ;;  %v327_v19 = vld [vmem:[%s1599_s28 + $0x438] sm:$0xff]  ;;  %v838_v24 = vadd.f32 %v582_v17, %v326_v16  ;;  %v602_v13 = vld [vmem:[%s1609_s5 + $0x4d0] sm:$0xff] }
  0xa2   : > { %1072 = vst [vmem:[%s1620_s20 + $0x380] sm:$0xff] %v816_v22  ;;  %v328_v22 = vld [vmem:[%s1599_s28 + $0x440] sm:$0xff]  ;;  %v839_v27 = vadd.f32 %v583_v20, %v327_v19  ;;  %v603_v16 = vld [vmem:[%s1609_s5 + $0x4d8] sm:$0xff] }
  0xa3   : > { %1073 = vst [vmem:[%s1620_s20 + $0x388] sm:$0xff] %v817_v25  ;;  %v329_v25 = vld [vmem:[%s1599_s28 + $0x448] sm:$0xff]  ;;  %v840_v30 = vadd.f32 %v584_v23, %v328_v22  ;;  %v604_v19 = vld [vmem:[%s1609_s5 + $0x4e0] sm:$0xff] }
  0xa4   : > { %1074 = vst [vmem:[%s1620_s20 + $0x390] sm:$0xff] %v818_v28  ;;  %v330_v28 = vld [vmem:[%s1599_s28 + $0x450] sm:$0xff]  ;;  %v841_v33 = vadd.f32 %v585_v26, %v329_v25  ;;  %v605_v22 = vld [vmem:[%s1609_s5 + $0x4e8] sm:$0xff] }
  0xa5   : > { %1075 = vst [vmem:[%s1620_s20 + $0x398] sm:$0xff] %v819_v31  ;;  %v331_v31 = vld [vmem:[%s1599_s28 + $0x458] sm:$0xff]  ;;  %v842_v36 = vadd.f32 %v586_v29, %v330_v28  ;;  %v606_v25 = vld [vmem:[%s1609_s5 + $0x4f0] sm:$0xff] }
  0xa6   : > { %1076 = vst [vmem:[%s1620_s20 + $0x3a0] sm:$0xff] %v820_v34  ;;  %v332_v34 = vld [vmem:[%s1599_s28 + $0x460] sm:$0xff]  ;;  %v843_v39 = vadd.f32 %v587_v32, %v331_v31  ;;  %v607_v28 = vld [vmem:[%s1609_s5 + $0x4f8] sm:$0xff] }
  0xa7   : > { %1077 = vst [vmem:[%s1620_s20 + $0x3a8] sm:$0xff] %v821_v37  ;;  %v333_v37 = vld [vmem:[%s1599_s28 + $0x468] sm:$0xff]  ;;  %v844_v42 = vadd.f32 %v588_v35, %v332_v34  ;;  %v608_v31 = vld [vmem:[%s1609_s5 + $0x500] sm:$0xff] }
  0xa8   : > { %1078 = vst [vmem:[%s1620_s20 + $0x3b0] sm:$0xff] %v822_v40  ;;  %v334_v40 = vld [vmem:[%s1599_s28 + $0x470] sm:$0xff]  ;;  %v845_v45 = vadd.f32 %v589_v38, %v333_v37  ;;  %v609_v34 = vld [vmem:[%s1609_s5 + $0x508] sm:$0xff] }
  0xa9   : > { %1079 = vst [vmem:[%s1620_s20 + $0x3b8] sm:$0xff] %v823_v43  ;;  %v335_v43 = vld [vmem:[%s1599_s28 + $0x478] sm:$0xff]  ;;  %v846_v48 = vadd.f32 %v590_v41, %v334_v40  ;;  %v610_v37 = vld [vmem:[%s1609_s5 + $0x510] sm:$0xff] }
  0xaa   : > { %1080 = vst [vmem:[%s1620_s20 + $0x3c0] sm:$0xff] %v824_v46  ;;  %v336_v46 = vld [vmem:[%s1599_s28 + $0x480] sm:$0xff]  ;;  %v847_v51 = vadd.f32 %v591_v44, %v335_v43  ;;  %v611_v40 = vld [vmem:[%s1609_s5 + $0x518] sm:$0xff] }
  0xab   : > { %1081 = vst [vmem:[%s1620_s20 + $0x3c8] sm:$0xff] %v825_v49  ;;  %v337_v49 = vld [vmem:[%s1599_s28 + $0x488] sm:$0xff]  ;;  %v848_v54 = vadd.f32 %v592_v47, %v336_v46  ;;  %v612_v43 = vld [vmem:[%s1609_s5 + $0x520] sm:$0xff] }
  0xac   : > { %1082 = vst [vmem:[%s1620_s20 + $0x3d0] sm:$0xff] %v826_v52  ;;  %v338_v52 = vld [vmem:[%s1599_s28 + $0x490] sm:$0xff]  ;;  %v849_v57 = vadd.f32 %v593_v50, %v337_v49  ;;  %v613_v46 = vld [vmem:[%s1609_s5 + $0x528] sm:$0xff] }
  0xad   : > { %1083 = vst [vmem:[%s1620_s20 + $0x3d8] sm:$0xff] %v827_v55  ;;  %v339_v55 = vld [vmem:[%s1599_s28 + $0x498] sm:$0xff]  ;;  %v850_v60 = vadd.f32 %v594_v53, %v338_v52  ;;  %v614_v49 = vld [vmem:[%s1609_s5 + $0x530] sm:$0xff] }
  0xae   : > { %1084 = vst [vmem:[%s1620_s20 + $0x3e0] sm:$0xff] %v828_v58  ;;  %v340_v58 = vld [vmem:[%s1599_s28 + $0x4a0] sm:$0xff]  ;;  %v851_v63 = vadd.f32 %v595_v56, %v339_v55  ;;  %v615_v52 = vld [vmem:[%s1609_s5 + $0x538] sm:$0xff] }
  0xaf   : > { %1085 = vst [vmem:[%s1620_s20 + $0x3e8] sm:$0xff] %v829_v61  ;;  %v341_v61 = vld [vmem:[%s1599_s28 + $0x4a8] sm:$0xff]  ;;  %v852_v2 = vadd.f32 %v596_v59, %v340_v58  ;;  %v616_v55 = vld [vmem:[%s1609_s5 + $0x540] sm:$0xff] }
  0xb0   : > { %1086 = vst [vmem:[%s1620_s20 + $0x3f0] sm:$0xff] %v830_v0  ;;  %v342_v0 = vld [vmem:[%s1599_s28 + $0x4b0] sm:$0xff]  ;;  %v853_v5 = vadd.f32 %v597_v62, %v341_v61  ;;  %v617_v58 = vld [vmem:[%s1609_s5 + $0x548] sm:$0xff] }
  0xb1   : > { %1087 = vst [vmem:[%s1620_s20 + $0x3f8] sm:$0xff] %v831_v3  ;;  %v343_v3 = vld [vmem:[%s1599_s28 + $0x4b8] sm:$0xff]  ;;  %v854_v8 = vadd.f32 %v598_v1, %v342_v0  ;;  %v618_v61 = vld [vmem:[%s1609_s5 + $0x550] sm:$0xff] }
  0xb2   : > { %1088 = vst [vmem:[%s1620_s20 + $0x400] sm:$0xff] %v832_v6  ;;  %v344_v6 = vld [vmem:[%s1599_s28 + $0x4c0] sm:$0xff]  ;;  %v855_v11 = vadd.f32 %v599_v4, %v343_v3  ;;  %v619_v0 = vld [vmem:[%s1609_s5 + $0x558] sm:$0xff] }
  0xb3   : > { %1089 = vst [vmem:[%s1620_s20 + $0x408] sm:$0xff] %v833_v9  ;;  %v345_v9 = vld [vmem:[%s1599_s28 + $0x4c8] sm:$0xff]  ;;  %v856_v14 = vadd.f32 %v600_v7, %v344_v6  ;;  %v620_v3 = vld [vmem:[%s1609_s5 + $0x560] sm:$0xff] }
  0xb4   : > { %1090 = vst [vmem:[%s1620_s20 + $0x410] sm:$0xff] %v834_v12  ;;  %v346_v12 = vld [vmem:[%s1599_s28 + $0x4d0] sm:$0xff]  ;;  %v857_v17 = vadd.f32 %v601_v10, %v345_v9  ;;  %v621_v6 = vld [vmem:[%s1609_s5 + $0x568] sm:$0xff] }
  0xb5   : > { %1091 = vst [vmem:[%s1620_s20 + $0x418] sm:$0xff] %v835_v15  ;;  %v347_v15 = vld [vmem:[%s1599_s28 + $0x4d8] sm:$0xff]  ;;  %v858_v20 = vadd.f32 %v602_v13, %v346_v12  ;;  %v622_v9 = vld [vmem:[%s1609_s5 + $0x570] sm:$0xff] }
  0xb6   : > { %1092 = vst [vmem:[%s1620_s20 + $0x420] sm:$0xff] %v836_v18  ;;  %v348_v18 = vld [vmem:[%s1599_s28 + $0x4e0] sm:$0xff]  ;;  %v859_v23 = vadd.f32 %v603_v16, %v347_v15  ;;  %v623_v12 = vld [vmem:[%s1609_s5 + $0x578] sm:$0xff] }
  0xb7   : > { %1093 = vst [vmem:[%s1620_s20 + $0x428] sm:$0xff] %v837_v21  ;;  %v349_v21 = vld [vmem:[%s1599_s28 + $0x4e8] sm:$0xff]  ;;  %v860_v26 = vadd.f32 %v604_v19, %v348_v18  ;;  %v624_v15 = vld [vmem:[%s1609_s5 + $0x580] sm:$0xff] }
  0xb8   : > { %1094 = vst [vmem:[%s1620_s20 + $0x430] sm:$0xff] %v838_v24  ;;  %v350_v24 = vld [vmem:[%s1599_s28 + $0x4f0] sm:$0xff]  ;;  %v861_v29 = vadd.f32 %v605_v22, %v349_v21  ;;  %v625_v18 = vld [vmem:[%s1609_s5 + $0x588] sm:$0xff] }
  0xb9   : > { %1095 = vst [vmem:[%s1620_s20 + $0x438] sm:$0xff] %v839_v27  ;;  %v351_v27 = vld [vmem:[%s1599_s28 + $0x4f8] sm:$0xff]  ;;  %v862_v32 = vadd.f32 %v606_v25, %v350_v24  ;;  %v626_v21 = vld [vmem:[%s1609_s5 + $0x590] sm:$0xff] }
  0xba   : > { %1096 = vst [vmem:[%s1620_s20 + $0x440] sm:$0xff] %v840_v30  ;;  %v352_v30 = vld [vmem:[%s1599_s28 + $0x500] sm:$0xff]  ;;  %v863_v35 = vadd.f32 %v607_v28, %v351_v27  ;;  %v627_v24 = vld [vmem:[%s1609_s5 + $0x598] sm:$0xff] }
  0xbb   : > { %1097 = vst [vmem:[%s1620_s20 + $0x448] sm:$0xff] %v841_v33  ;;  %v353_v33 = vld [vmem:[%s1599_s28 + $0x508] sm:$0xff]  ;;  %v864_v38 = vadd.f32 %v608_v31, %v352_v30  ;;  %v628_v27 = vld [vmem:[%s1609_s5 + $0x5a0] sm:$0xff] }
  0xbc   : > { %1098 = vst [vmem:[%s1620_s20 + $0x450] sm:$0xff] %v842_v36  ;;  %v354_v36 = vld [vmem:[%s1599_s28 + $0x510] sm:$0xff]  ;;  %v865_v41 = vadd.f32 %v609_v34, %v353_v33  ;;  %v629_v30 = vld [vmem:[%s1609_s5 + $0x5a8] sm:$0xff] }
  0xbd   : > { %1099 = vst [vmem:[%s1620_s20 + $0x458] sm:$0xff] %v843_v39  ;;  %v355_v39 = vld [vmem:[%s1599_s28 + $0x518] sm:$0xff]  ;;  %v866_v44 = vadd.f32 %v610_v37, %v354_v36  ;;  %v630_v33 = vld [vmem:[%s1609_s5 + $0x5b0] sm:$0xff] }
  0xbe   : > { %1100 = vst [vmem:[%s1620_s20 + $0x460] sm:$0xff] %v844_v42  ;;  %v356_v42 = vld [vmem:[%s1599_s28 + $0x520] sm:$0xff]  ;;  %v867_v47 = vadd.f32 %v611_v40, %v355_v39  ;;  %v631_v36 = vld [vmem:[%s1609_s5 + $0x5b8] sm:$0xff] }
  0xbf   : > { %1101 = vst [vmem:[%s1620_s20 + $0x468] sm:$0xff] %v845_v45  ;;  %v357_v45 = vld [vmem:[%s1599_s28 + $0x528] sm:$0xff]  ;;  %v868_v50 = vadd.f32 %v612_v43, %v356_v42  ;;  %v632_v39 = vld [vmem:[%s1609_s5 + $0x5c0] sm:$0xff] }
  0xc0   : > { %1102 = vst [vmem:[%s1620_s20 + $0x470] sm:$0xff] %v846_v48  ;;  %v358_v48 = vld [vmem:[%s1599_s28 + $0x530] sm:$0xff]  ;;  %v869_v53 = vadd.f32 %v613_v46, %v357_v45  ;;  %v633_v42 = vld [vmem:[%s1609_s5 + $0x5c8] sm:$0xff] }
  0xc1   : > { %1103 = vst [vmem:[%s1620_s20 + $0x478] sm:$0xff] %v847_v51  ;;  %v359_v51 = vld [vmem:[%s1599_s28 + $0x538] sm:$0xff]  ;;  %v870_v56 = vadd.f32 %v614_v49, %v358_v48  ;;  %v634_v45 = vld [vmem:[%s1609_s5 + $0x5d0] sm:$0xff] }
  0xc2   : > { %1104 = vst [vmem:[%s1620_s20 + $0x480] sm:$0xff] %v848_v54  ;;  %v360_v54 = vld [vmem:[%s1599_s28 + $0x540] sm:$0xff]  ;;  %v871_v59 = vadd.f32 %v615_v52, %v359_v51  ;;  %v635_v48 = vld [vmem:[%s1609_s5 + $0x5d8] sm:$0xff] }
  0xc3   : > { %1105 = vst [vmem:[%s1620_s20 + $0x488] sm:$0xff] %v849_v57  ;;  %v361_v57 = vld [vmem:[%s1599_s28 + $0x548] sm:$0xff]  ;;  %v872_v62 = vadd.f32 %v616_v55, %v360_v54  ;;  %v636_v51 = vld [vmem:[%s1609_s5 + $0x5e0] sm:$0xff] }
  0xc4   : > { %1106 = vst [vmem:[%s1620_s20 + $0x490] sm:$0xff] %v850_v60  ;;  %v362_v60 = vld [vmem:[%s1599_s28 + $0x550] sm:$0xff]  ;;  %v873_v1 = vadd.f32 %v617_v58, %v361_v57  ;;  %v637_v54 = vld [vmem:[%s1609_s5 + $0x5e8] sm:$0xff] }
  0xc5   : > { %1107 = vst [vmem:[%s1620_s20 + $0x498] sm:$0xff] %v851_v63  ;;  %v363_v63 = vld [vmem:[%s1599_s28 + $0x558] sm:$0xff]  ;;  %v874_v4 = vadd.f32 %v618_v61, %v362_v60  ;;  %v638_v57 = vld [vmem:[%s1609_s5 + $0x5f0] sm:$0xff] }
  0xc6   : > { %1108 = vst [vmem:[%s1620_s20 + $0x4a0] sm:$0xff] %v852_v2  ;;  %v364_v2 = vld [vmem:[%s1599_s28 + $0x560] sm:$0xff]  ;;  %v875_v7 = vadd.f32 %v619_v0, %v363_v63  ;;  %v639_v60 = vld [vmem:[%s1609_s5 + $0x5f8] sm:$0xff] }
  0xc7   : > { %1109 = vst [vmem:[%s1620_s20 + $0x4a8] sm:$0xff] %v853_v5  ;;  %v365_v5 = vld [vmem:[%s1599_s28 + $0x568] sm:$0xff]  ;;  %v876_v10 = vadd.f32 %v620_v3, %v364_v2  ;;  %v640_v63 = vld [vmem:[%s1609_s5 + $0x600] sm:$0xff] }
  0xc8   : > { %1110 = vst [vmem:[%s1620_s20 + $0x4b0] sm:$0xff] %v854_v8  ;;  %v366_v8 = vld [vmem:[%s1599_s28 + $0x570] sm:$0xff]  ;;  %v877_v13 = vadd.f32 %v621_v6, %v365_v5  ;;  %v641_v2 = vld [vmem:[%s1609_s5 + $0x608] sm:$0xff] }
  0xc9   : > { %1111 = vst [vmem:[%s1620_s20 + $0x4b8] sm:$0xff] %v855_v11  ;;  %v367_v11 = vld [vmem:[%s1599_s28 + $0x578] sm:$0xff]  ;;  %v878_v16 = vadd.f32 %v622_v9, %v366_v8  ;;  %v642_v5 = vld [vmem:[%s1609_s5 + $0x610] sm:$0xff] }
  0xca   : > { %1112 = vst [vmem:[%s1620_s20 + $0x4c0] sm:$0xff] %v856_v14  ;;  %v368_v14 = vld [vmem:[%s1599_s28 + $0x580] sm:$0xff]  ;;  %v879_v19 = vadd.f32 %v623_v12, %v367_v11  ;;  %v643_v8 = vld [vmem:[%s1609_s5 + $0x618] sm:$0xff] }
  0xcb   : > { %1113 = vst [vmem:[%s1620_s20 + $0x4c8] sm:$0xff] %v857_v17  ;;  %v369_v17 = vld [vmem:[%s1599_s28 + $0x588] sm:$0xff]  ;;  %v880_v22 = vadd.f32 %v624_v15, %v368_v14  ;;  %v644_v11 = vld [vmem:[%s1609_s5 + $0x620] sm:$0xff] }
  0xcc   : > { %1114 = vst [vmem:[%s1620_s20 + $0x4d0] sm:$0xff] %v858_v20  ;;  %v370_v20 = vld [vmem:[%s1599_s28 + $0x590] sm:$0xff]  ;;  %v881_v25 = vadd.f32 %v625_v18, %v369_v17  ;;  %v645_v14 = vld [vmem:[%s1609_s5 + $0x628] sm:$0xff] }
  0xcd   : > { %1115 = vst [vmem:[%s1620_s20 + $0x4d8] sm:$0xff] %v859_v23  ;;  %v371_v23 = vld [vmem:[%s1599_s28 + $0x598] sm:$0xff]  ;;  %v882_v28 = vadd.f32 %v626_v21, %v370_v20  ;;  %v646_v17 = vld [vmem:[%s1609_s5 + $0x630] sm:$0xff] }
  0xce   : > { %1116 = vst [vmem:[%s1620_s20 + $0x4e0] sm:$0xff] %v860_v26  ;;  %v372_v26 = vld [vmem:[%s1599_s28 + $0x5a0] sm:$0xff]  ;;  %v883_v31 = vadd.f32 %v627_v24, %v371_v23  ;;  %v647_v20 = vld [vmem:[%s1609_s5 + $0x638] sm:$0xff] }
  0xcf   : > { %1117 = vst [vmem:[%s1620_s20 + $0x4e8] sm:$0xff] %v861_v29  ;;  %v373_v29 = vld [vmem:[%s1599_s28 + $0x5a8] sm:$0xff]  ;;  %v884_v34 = vadd.f32 %v628_v27, %v372_v26  ;;  %v648_v23 = vld [vmem:[%s1609_s5 + $0x640] sm:$0xff] }
  0xd0   : > { %1118 = vst [vmem:[%s1620_s20 + $0x4f0] sm:$0xff] %v862_v32  ;;  %v374_v32 = vld [vmem:[%s1599_s28 + $0x5b0] sm:$0xff]  ;;  %v885_v37 = vadd.f32 %v629_v30, %v373_v29  ;;  %v649_v26 = vld [vmem:[%s1609_s5 + $0x648] sm:$0xff] }
  0xd1   : > { %1119 = vst [vmem:[%s1620_s20 + $0x4f8] sm:$0xff] %v863_v35  ;;  %v375_v35 = vld [vmem:[%s1599_s28 + $0x5b8] sm:$0xff]  ;;  %v886_v40 = vadd.f32 %v630_v33, %v374_v32  ;;  %v650_v29 = vld [vmem:[%s1609_s5 + $0x650] sm:$0xff] }
  0xd2   : > { %1120 = vst [vmem:[%s1620_s20 + $0x500] sm:$0xff] %v864_v38  ;;  %v376_v38 = vld [vmem:[%s1599_s28 + $0x5c0] sm:$0xff]  ;;  %v887_v43 = vadd.f32 %v631_v36, %v375_v35  ;;  %v651_v32 = vld [vmem:[%s1609_s5 + $0x658] sm:$0xff] }
  0xd3   : > { %1121 = vst [vmem:[%s1620_s20 + $0x508] sm:$0xff] %v865_v41  ;;  %v377_v41 = vld [vmem:[%s1599_s28 + $0x5c8] sm:$0xff]  ;;  %v888_v46 = vadd.f32 %v632_v39, %v376_v38  ;;  %v652_v35 = vld [vmem:[%s1609_s5 + $0x660] sm:$0xff] }
  0xd4   : > { %1122 = vst [vmem:[%s1620_s20 + $0x510] sm:$0xff] %v866_v44  ;;  %v378_v44 = vld [vmem:[%s1599_s28 + $0x5d0] sm:$0xff]  ;;  %v889_v49 = vadd.f32 %v633_v42, %v377_v41  ;;  %v653_v38 = vld [vmem:[%s1609_s5 + $0x668] sm:$0xff] }
  0xd5   : > { %1123 = vst [vmem:[%s1620_s20 + $0x518] sm:$0xff] %v867_v47  ;;  %v379_v47 = vld [vmem:[%s1599_s28 + $0x5d8] sm:$0xff]  ;;  %v890_v52 = vadd.f32 %v634_v45, %v378_v44  ;;  %v654_v41 = vld [vmem:[%s1609_s5 + $0x670] sm:$0xff] }
  0xd6   : > { %1124 = vst [vmem:[%s1620_s20 + $0x520] sm:$0xff] %v868_v50  ;;  %v380_v50 = vld [vmem:[%s1599_s28 + $0x5e0] sm:$0xff]  ;;  %v891_v55 = vadd.f32 %v635_v48, %v379_v47  ;;  %v655_v44 = vld [vmem:[%s1609_s5 + $0x678] sm:$0xff] }
  0xd7   : > { %1125 = vst [vmem:[%s1620_s20 + $0x528] sm:$0xff] %v869_v53  ;;  %v381_v53 = vld [vmem:[%s1599_s28 + $0x5e8] sm:$0xff]  ;;  %v892_v58 = vadd.f32 %v636_v51, %v380_v50  ;;  %v656_v47 = vld [vmem:[%s1609_s5 + $0x680] sm:$0xff] }
  0xd8   : > { %1126 = vst [vmem:[%s1620_s20 + $0x530] sm:$0xff] %v870_v56  ;;  %v382_v56 = vld [vmem:[%s1599_s28 + $0x5f0] sm:$0xff]  ;;  %v893_v61 = vadd.f32 %v637_v54, %v381_v53  ;;  %v657_v50 = vld [vmem:[%s1609_s5 + $0x688] sm:$0xff] }
  0xd9   : > { %1127 = vst [vmem:[%s1620_s20 + $0x538] sm:$0xff] %v871_v59  ;;  %v383_v59 = vld [vmem:[%s1599_s28 + $0x5f8] sm:$0xff]  ;;  %v894_v0 = vadd.f32 %v638_v57, %v382_v56  ;;  %v658_v53 = vld [vmem:[%s1609_s5 + $0x690] sm:$0xff] }
  0xda   : > { %1128 = vst [vmem:[%s1620_s20 + $0x540] sm:$0xff] %v872_v62  ;;  %v384_v62 = vld [vmem:[%s1599_s28 + $0x600] sm:$0xff]  ;;  %v895_v3 = vadd.f32 %v639_v60, %v383_v59  ;;  %v659_v56 = vld [vmem:[%s1609_s5 + $0x698] sm:$0xff] }
  0xdb   : > { %1129 = vst [vmem:[%s1620_s20 + $0x548] sm:$0xff] %v873_v1  ;;  %v385_v1 = vld [vmem:[%s1599_s28 + $0x608] sm:$0xff]  ;;  %v896_v6 = vadd.f32 %v640_v63, %v384_v62  ;;  %v660_v59 = vld [vmem:[%s1609_s5 + $0x6a0] sm:$0xff] }
  0xdc   : > { %1130 = vst [vmem:[%s1620_s20 + $0x550] sm:$0xff] %v874_v4  ;;  %v386_v4 = vld [vmem:[%s1599_s28 + $0x610] sm:$0xff]  ;;  %v897_v9 = vadd.f32 %v641_v2, %v385_v1  ;;  %v661_v62 = vld [vmem:[%s1609_s5 + $0x6a8] sm:$0xff] }
  0xdd   : > { %1131 = vst [vmem:[%s1620_s20 + $0x558] sm:$0xff] %v875_v7  ;;  %v387_v7 = vld [vmem:[%s1599_s28 + $0x618] sm:$0xff]  ;;  %v898_v12 = vadd.f32 %v642_v5, %v386_v4  ;;  %v662_v1 = vld [vmem:[%s1609_s5 + $0x6b0] sm:$0xff] }
  0xde   : > { %1132 = vst [vmem:[%s1620_s20 + $0x560] sm:$0xff] %v876_v10  ;;  %v388_v10 = vld [vmem:[%s1599_s28 + $0x620] sm:$0xff]  ;;  %v899_v15 = vadd.f32 %v643_v8, %v387_v7  ;;  %v663_v4 = vld [vmem:[%s1609_s5 + $0x6b8] sm:$0xff] }
  0xdf   : > { %1133 = vst [vmem:[%s1620_s20 + $0x568] sm:$0xff] %v877_v13  ;;  %v389_v13 = vld [vmem:[%s1599_s28 + $0x628] sm:$0xff]  ;;  %v900_v18 = vadd.f32 %v644_v11, %v388_v10  ;;  %v664_v7 = vld [vmem:[%s1609_s5 + $0x6c0] sm:$0xff] }
  0xe0   : > { %1134 = vst [vmem:[%s1620_s20 + $0x570] sm:$0xff] %v878_v16  ;;  %v390_v16 = vld [vmem:[%s1599_s28 + $0x630] sm:$0xff]  ;;  %v901_v21 = vadd.f32 %v645_v14, %v389_v13  ;;  %v665_v10 = vld [vmem:[%s1609_s5 + $0x6c8] sm:$0xff] }
  0xe1   : > { %1135 = vst [vmem:[%s1620_s20 + $0x578] sm:$0xff] %v879_v19  ;;  %v391_v19 = vld [vmem:[%s1599_s28 + $0x638] sm:$0xff]  ;;  %v902_v24 = vadd.f32 %v646_v17, %v390_v16  ;;  %v666_v13 = vld [vmem:[%s1609_s5 + $0x6d0] sm:$0xff] }
  0xe2   : > { %1136 = vst [vmem:[%s1620_s20 + $0x580] sm:$0xff] %v880_v22  ;;  %v392_v22 = vld [vmem:[%s1599_s28 + $0x640] sm:$0xff]  ;;  %v903_v27 = vadd.f32 %v647_v20, %v391_v19  ;;  %v667_v16 = vld [vmem:[%s1609_s5 + $0x6d8] sm:$0xff] }
  0xe3   : > { %1137 = vst [vmem:[%s1620_s20 + $0x588] sm:$0xff] %v881_v25  ;;  %v393_v25 = vld [vmem:[%s1599_s28 + $0x648] sm:$0xff]  ;;  %v904_v30 = vadd.f32 %v648_v23, %v392_v22  ;;  %v668_v19 = vld [vmem:[%s1609_s5 + $0x6e0] sm:$0xff] }
  0xe4   : > { %1138 = vst [vmem:[%s1620_s20 + $0x590] sm:$0xff] %v882_v28  ;;  %v394_v28 = vld [vmem:[%s1599_s28 + $0x650] sm:$0xff]  ;;  %v905_v33 = vadd.f32 %v649_v26, %v393_v25  ;;  %v669_v22 = vld [vmem:[%s1609_s5 + $0x6e8] sm:$0xff] }
  0xe5   : > { %1139 = vst [vmem:[%s1620_s20 + $0x598] sm:$0xff] %v883_v31  ;;  %v395_v31 = vld [vmem:[%s1599_s28 + $0x658] sm:$0xff]  ;;  %v906_v36 = vadd.f32 %v650_v29, %v394_v28  ;;  %v670_v25 = vld [vmem:[%s1609_s5 + $0x6f0] sm:$0xff] }
  0xe6   : > { %1140 = vst [vmem:[%s1620_s20 + $0x5a0] sm:$0xff] %v884_v34  ;;  %v396_v34 = vld [vmem:[%s1599_s28 + $0x660] sm:$0xff]  ;;  %v907_v39 = vadd.f32 %v651_v32, %v395_v31  ;;  %v671_v28 = vld [vmem:[%s1609_s5 + $0x6f8] sm:$0xff] }
  0xe7   : > { %1141 = vst [vmem:[%s1620_s20 + $0x5a8] sm:$0xff] %v885_v37  ;;  %v397_v37 = vld [vmem:[%s1599_s28 + $0x668] sm:$0xff]  ;;  %v908_v42 = vadd.f32 %v652_v35, %v396_v34  ;;  %v672_v31 = vld [vmem:[%s1609_s5 + $0x700] sm:$0xff] }
  0xe8   : > { %1142 = vst [vmem:[%s1620_s20 + $0x5b0] sm:$0xff] %v886_v40  ;;  %v398_v40 = vld [vmem:[%s1599_s28 + $0x670] sm:$0xff]  ;;  %v909_v45 = vadd.f32 %v653_v38, %v397_v37  ;;  %v673_v34 = vld [vmem:[%s1609_s5 + $0x708] sm:$0xff] }
  0xe9   : > { %1143 = vst [vmem:[%s1620_s20 + $0x5b8] sm:$0xff] %v887_v43  ;;  %v399_v43 = vld [vmem:[%s1599_s28 + $0x678] sm:$0xff]  ;;  %v910_v48 = vadd.f32 %v654_v41, %v398_v40  ;;  %v674_v37 = vld [vmem:[%s1609_s5 + $0x710] sm:$0xff] }
  0xea   : > { %1144 = vst [vmem:[%s1620_s20 + $0x5c0] sm:$0xff] %v888_v46  ;;  %v400_v46 = vld [vmem:[%s1599_s28 + $0x680] sm:$0xff]  ;;  %v911_v51 = vadd.f32 %v655_v44, %v399_v43  ;;  %v675_v40 = vld [vmem:[%s1609_s5 + $0x718] sm:$0xff] }
  0xeb   : > { %1145 = vst [vmem:[%s1620_s20 + $0x5c8] sm:$0xff] %v889_v49  ;;  %v401_v49 = vld [vmem:[%s1599_s28 + $0x688] sm:$0xff]  ;;  %v912_v54 = vadd.f32 %v656_v47, %v400_v46  ;;  %v676_v43 = vld [vmem:[%s1609_s5 + $0x720] sm:$0xff] }
  0xec   : > { %1146 = vst [vmem:[%s1620_s20 + $0x5d0] sm:$0xff] %v890_v52  ;;  %v402_v52 = vld [vmem:[%s1599_s28 + $0x690] sm:$0xff]  ;;  %v913_v57 = vadd.f32 %v657_v50, %v401_v49  ;;  %v677_v46 = vld [vmem:[%s1609_s5 + $0x728] sm:$0xff] }
  0xed   : > { %1147 = vst [vmem:[%s1620_s20 + $0x5d8] sm:$0xff] %v891_v55  ;;  %v403_v55 = vld [vmem:[%s1599_s28 + $0x698] sm:$0xff]  ;;  %v914_v60 = vadd.f32 %v658_v53, %v402_v52  ;;  %v678_v49 = vld [vmem:[%s1609_s5 + $0x730] sm:$0xff] }
  0xee   : > { %1148 = vst [vmem:[%s1620_s20 + $0x5e0] sm:$0xff] %v892_v58  ;;  %v404_v58 = vld [vmem:[%s1599_s28 + $0x6a0] sm:$0xff]  ;;  %v915_v63 = vadd.f32 %v659_v56, %v403_v55  ;;  %v679_v52 = vld [vmem:[%s1609_s5 + $0x738] sm:$0xff] }
  0xef   : > { %1149 = vst [vmem:[%s1620_s20 + $0x5e8] sm:$0xff] %v893_v61  ;;  %v405_v61 = vld [vmem:[%s1599_s28 + $0x6a8] sm:$0xff]  ;;  %v916_v2 = vadd.f32 %v660_v59, %v404_v58  ;;  %v680_v55 = vld [vmem:[%s1609_s5 + $0x740] sm:$0xff] }
  0xf0   : > { %1150 = vst [vmem:[%s1620_s20 + $0x5f0] sm:$0xff] %v894_v0  ;;  %v406_v0 = vld [vmem:[%s1599_s28 + $0x6b0] sm:$0xff]  ;;  %v917_v5 = vadd.f32 %v661_v62, %v405_v61  ;;  %v681_v58 = vld [vmem:[%s1609_s5 + $0x748] sm:$0xff] }
  0xf1   : > { %1151 = vst [vmem:[%s1620_s20 + $0x5f8] sm:$0xff] %v895_v3  ;;  %v407_v3 = vld [vmem:[%s1599_s28 + $0x6b8] sm:$0xff]  ;;  %v918_v8 = vadd.f32 %v662_v1, %v406_v0  ;;  %v682_v61 = vld [vmem:[%s1609_s5 + $0x750] sm:$0xff] }
  0xf2   : > { %1152 = vst [vmem:[%s1620_s20 + $0x600] sm:$0xff] %v896_v6  ;;  %v408_v6 = vld [vmem:[%s1599_s28 + $0x6c0] sm:$0xff]  ;;  %v919_v11 = vadd.f32 %v663_v4, %v407_v3  ;;  %v683_v0 = vld [vmem:[%s1609_s5 + $0x758] sm:$0xff] }
  0xf3   : > { %1153 = vst [vmem:[%s1620_s20 + $0x608] sm:$0xff] %v897_v9  ;;  %v409_v9 = vld [vmem:[%s1599_s28 + $0x6c8] sm:$0xff]  ;;  %v920_v14 = vadd.f32 %v664_v7, %v408_v6  ;;  %v684_v3 = vld [vmem:[%s1609_s5 + $0x760] sm:$0xff] }
  0xf4   : > { %1154 = vst [vmem:[%s1620_s20 + $0x610] sm:$0xff] %v898_v12  ;;  %v410_v12 = vld [vmem:[%s1599_s28 + $0x6d0] sm:$0xff]  ;;  %v921_v17 = vadd.f32 %v665_v10, %v409_v9  ;;  %v685_v6 = vld [vmem:[%s1609_s5 + $0x768] sm:$0xff] }
  0xf5   : > { %1155 = vst [vmem:[%s1620_s20 + $0x618] sm:$0xff] %v899_v15  ;;  %v411_v15 = vld [vmem:[%s1599_s28 + $0x6d8] sm:$0xff]  ;;  %v922_v20 = vadd.f32 %v666_v13, %v410_v12  ;;  %v686_v9 = vld [vmem:[%s1609_s5 + $0x770] sm:$0xff] }
  0xf6   : > { %1156 = vst [vmem:[%s1620_s20 + $0x620] sm:$0xff] %v900_v18  ;;  %v412_v18 = vld [vmem:[%s1599_s28 + $0x6e0] sm:$0xff]  ;;  %v923_v23 = vadd.f32 %v667_v16, %v411_v15  ;;  %v687_v12 = vld [vmem:[%s1609_s5 + $0x778] sm:$0xff] }
  0xf7   : > { %1157 = vst [vmem:[%s1620_s20 + $0x628] sm:$0xff] %v901_v21  ;;  %v413_v21 = vld [vmem:[%s1599_s28 + $0x6e8] sm:$0xff]  ;;  %v924_v26 = vadd.f32 %v668_v19, %v412_v18  ;;  %v688_v15 = vld [vmem:[%s1609_s5 + $0x780] sm:$0xff] }
  0xf8   : > { %1158 = vst [vmem:[%s1620_s20 + $0x630] sm:$0xff] %v902_v24  ;;  %v414_v24 = vld [vmem:[%s1599_s28 + $0x6f0] sm:$0xff]  ;;  %v925_v29 = vadd.f32 %v669_v22, %v413_v21  ;;  %v689_v18 = vld [vmem:[%s1609_s5 + $0x788] sm:$0xff] }
  0xf9   : > { %1159 = vst [vmem:[%s1620_s20 + $0x638] sm:$0xff] %v903_v27  ;;  %v415_v27 = vld [vmem:[%s1599_s28 + $0x6f8] sm:$0xff]  ;;  %v926_v32 = vadd.f32 %v670_v25, %v414_v24  ;;  %v690_v21 = vld [vmem:[%s1609_s5 + $0x790] sm:$0xff] }
  0xfa   : > { %1160 = vst [vmem:[%s1620_s20 + $0x640] sm:$0xff] %v904_v30  ;;  %v416_v30 = vld [vmem:[%s1599_s28 + $0x700] sm:$0xff]  ;;  %v927_v35 = vadd.f32 %v671_v28, %v415_v27  ;;  %v691_v24 = vld [vmem:[%s1609_s5 + $0x798] sm:$0xff] }
  0xfb   : > { %1161 = vst [vmem:[%s1620_s20 + $0x648] sm:$0xff] %v905_v33  ;;  %v417_v33 = vld [vmem:[%s1599_s28 + $0x708] sm:$0xff]  ;;  %v928_v38 = vadd.f32 %v672_v31, %v416_v30  ;;  %v692_v27 = vld [vmem:[%s1609_s5 + $0x7a0] sm:$0xff] }
  0xfc   : > { %1162 = vst [vmem:[%s1620_s20 + $0x650] sm:$0xff] %v906_v36  ;;  %v418_v36 = vld [vmem:[%s1599_s28 + $0x710] sm:$0xff]  ;;  %v929_v41 = vadd.f32 %v673_v34, %v417_v33  ;;  %v693_v30 = vld [vmem:[%s1609_s5 + $0x7a8] sm:$0xff] }
  0xfd   : > { %1163 = vst [vmem:[%s1620_s20 + $0x658] sm:$0xff] %v907_v39  ;;  %v419_v39 = vld [vmem:[%s1599_s28 + $0x718] sm:$0xff]  ;;  %v930_v44 = vadd.f32 %v674_v37, %v418_v36  ;;  %v694_v33 = vld [vmem:[%s1609_s5 + $0x7b0] sm:$0xff] }
  0xfe   : > { %1164 = vst [vmem:[%s1620_s20 + $0x660] sm:$0xff] %v908_v42  ;;  %v420_v42 = vld [vmem:[%s1599_s28 + $0x720] sm:$0xff]  ;;  %v931_v47 = vadd.f32 %v675_v40, %v419_v39  ;;  %v695_v36 = vld [vmem:[%s1609_s5 + $0x7b8] sm:$0xff] }
  0xff   : > { %1165 = vst [vmem:[%s1620_s20 + $0x668] sm:$0xff] %v909_v45  ;;  %v421_v45 = vld [vmem:[%s1599_s28 + $0x728] sm:$0xff]  ;;  %v932_v50 = vadd.f32 %v676_v43, %v420_v42  ;;  %v696_v39 = vld [vmem:[%s1609_s5 + $0x7c0] sm:$0xff] }
 0x100   : > { %1166 = vst [vmem:[%s1620_s20 + $0x670] sm:$0xff] %v910_v48  ;;  %v422_v48 = vld [vmem:[%s1599_s28 + $0x730] sm:$0xff]  ;;  %v933_v53 = vadd.f32 %v677_v46, %v421_v45  ;;  %v697_v42 = vld [vmem:[%s1609_s5 + $0x7c8] sm:$0xff] }
 0x101   : > { %1167 = vst [vmem:[%s1620_s20 + $0x678] sm:$0xff] %v911_v51  ;;  %v423_v51 = vld [vmem:[%s1599_s28 + $0x738] sm:$0xff]  ;;  %v934_v56 = vadd.f32 %v678_v49, %v422_v48  ;;  %v698_v45 = vld [vmem:[%s1609_s5 + $0x7d0] sm:$0xff] }
 0x102   : > { %1168 = vst [vmem:[%s1620_s20 + $0x680] sm:$0xff] %v912_v54  ;;  %v424_v54 = vld [vmem:[%s1599_s28 + $0x740] sm:$0xff]  ;;  %v935_v59 = vadd.f32 %v679_v52, %v423_v51  ;;  %v699_v48 = vld [vmem:[%s1609_s5 + $0x7d8] sm:$0xff] }
 0x103   : > { %1169 = vst [vmem:[%s1620_s20 + $0x688] sm:$0xff] %v913_v57  ;;  %v425_v57 = vld [vmem:[%s1599_s28 + $0x748] sm:$0xff]  ;;  %v936_v62 = vadd.f32 %v680_v55, %v424_v54  ;;  %v700_v51 = vld [vmem:[%s1609_s5 + $0x7e0] sm:$0xff] }
 0x104   : > { %1170 = vst [vmem:[%s1620_s20 + $0x690] sm:$0xff] %v914_v60  ;;  %v426_v60 = vld [vmem:[%s1599_s28 + $0x750] sm:$0xff]  ;;  %v937_v1 = vadd.f32 %v681_v58, %v425_v57  ;;  %v701_v54 = vld [vmem:[%s1609_s5 + $0x7e8] sm:$0xff] }
 0x105   : > { %1171 = vst [vmem:[%s1620_s20 + $0x698] sm:$0xff] %v915_v63  ;;  %v427_v63 = vld [vmem:[%s1599_s28 + $0x758] sm:$0xff]  ;;  %v938_v4 = vadd.f32 %v682_v61, %v426_v60  ;;  %v702_v57 = vld [vmem:[%s1609_s5 + $0x7f0] sm:$0xff] }
 0x106   : > { %1172 = vst [vmem:[%s1620_s20 + $0x6a0] sm:$0xff] %v916_v2  ;;  %v428_v2 = vld [vmem:[%s1599_s28 + $0x760] sm:$0xff]  ;;  %v939_v7 = vadd.f32 %v683_v0, %v427_v63  ;;  %v703_v60 = vld [vmem:[%s1609_s5 + $0x7f8] sm:$0xff] }
 0x107   : > { %1173 = vst [vmem:[%s1620_s20 + $0x6a8] sm:$0xff] %v917_v5  ;;  %v429_v5 = vld [vmem:[%s1599_s28 + $0x768] sm:$0xff]  ;;  %v940_v10 = vadd.f32 %v684_v3, %v428_v2 }
 0x108   : > { %1174 = vst [vmem:[%s1620_s20 + $0x6b0] sm:$0xff] %v918_v8  ;;  %v430_v8 = vld [vmem:[%s1599_s28 + $0x770] sm:$0xff]  ;;  %v941_v13 = vadd.f32 %v685_v6, %v429_v5 }
 0x109   : > { %1175 = vst [vmem:[%s1620_s20 + $0x6b8] sm:$0xff] %v919_v11  ;;  %v431_v11 = vld [vmem:[%s1599_s28 + $0x778] sm:$0xff]  ;;  %v942_v16 = vadd.f32 %v686_v9, %v430_v8 }
 0x10a   : > { %1176 = vst [vmem:[%s1620_s20 + $0x6c0] sm:$0xff] %v920_v14  ;;  %v432_v14 = vld [vmem:[%s1599_s28 + $0x780] sm:$0xff]  ;;  %v943_v19 = vadd.f32 %v687_v12, %v431_v11 }
 0x10b   : > { %1177 = vst [vmem:[%s1620_s20 + $0x6c8] sm:$0xff] %v921_v17  ;;  %v433_v17 = vld [vmem:[%s1599_s28 + $0x788] sm:$0xff]  ;;  %v944_v22 = vadd.f32 %v688_v15, %v432_v14 }
 0x10c   : > { %1178 = vst [vmem:[%s1620_s20 + $0x6d0] sm:$0xff] %v922_v20  ;;  %v434_v20 = vld [vmem:[%s1599_s28 + $0x790] sm:$0xff]  ;;  %v945_v25 = vadd.f32 %v689_v18, %v433_v17 }
 0x10d   : > { %1179 = vst [vmem:[%s1620_s20 + $0x6d8] sm:$0xff] %v923_v23  ;;  %v435_v23 = vld [vmem:[%s1599_s28 + $0x798] sm:$0xff]  ;;  %v946_v28 = vadd.f32 %v690_v21, %v434_v20 }
 0x10e   : > { %1180 = vst [vmem:[%s1620_s20 + $0x6e0] sm:$0xff] %v924_v26  ;;  %v436_v26 = vld [vmem:[%s1599_s28 + $0x7a0] sm:$0xff]  ;;  %v947_v31 = vadd.f32 %v691_v24, %v435_v23 }
 0x10f   : > { %1181 = vst [vmem:[%s1620_s20 + $0x6e8] sm:$0xff] %v925_v29  ;;  %v437_v29 = vld [vmem:[%s1599_s28 + $0x7a8] sm:$0xff]  ;;  %v948_v34 = vadd.f32 %v692_v27, %v436_v26 }
 0x110   : > { %1182 = vst [vmem:[%s1620_s20 + $0x6f0] sm:$0xff] %v926_v32  ;;  %v438_v32 = vld [vmem:[%s1599_s28 + $0x7b0] sm:$0xff]  ;;  %v949_v37 = vadd.f32 %v693_v30, %v437_v29 }
 0x111   : > { %1183 = vst [vmem:[%s1620_s20 + $0x6f8] sm:$0xff] %v927_v35  ;;  %v439_v35 = vld [vmem:[%s1599_s28 + $0x7b8] sm:$0xff]  ;;  %v950_v40 = vadd.f32 %v694_v33, %v438_v32 }
 0x112   : > { %1184 = vst [vmem:[%s1620_s20 + $0x700] sm:$0xff] %v928_v38  ;;  %v440_v38 = vld [vmem:[%s1599_s28 + $0x7c0] sm:$0xff]  ;;  %v951_v43 = vadd.f32 %v695_v36, %v439_v35 }
 0x113   : > { %1185 = vst [vmem:[%s1620_s20 + $0x708] sm:$0xff] %v929_v41  ;;  %v441_v41 = vld [vmem:[%s1599_s28 + $0x7c8] sm:$0xff]  ;;  %v952_v46 = vadd.f32 %v696_v39, %v440_v38 }
 0x114   : > { %1186 = vst [vmem:[%s1620_s20 + $0x710] sm:$0xff] %v930_v44  ;;  %v442_v44 = vld [vmem:[%s1599_s28 + $0x7d0] sm:$0xff]  ;;  %v953_v49 = vadd.f32 %v697_v42, %v441_v41 }
 0x115   : > { %1187 = vst [vmem:[%s1620_s20 + $0x718] sm:$0xff] %v931_v47  ;;  %v443_v47 = vld [vmem:[%s1599_s28 + $0x7d8] sm:$0xff]  ;;  %v954_v52 = vadd.f32 %v698_v45, %v442_v44 }
 0x116   : > { %1188 = vst [vmem:[%s1620_s20 + $0x720] sm:$0xff] %v932_v50  ;;  %v444_v50 = vld [vmem:[%s1599_s28 + $0x7e0] sm:$0xff]  ;;  %v955_v55 = vadd.f32 %v699_v48, %v443_v47 }
 0x117   : > { %1189 = vst [vmem:[%s1620_s20 + $0x728] sm:$0xff] %v933_v53  ;;  %v445_v53 = vld [vmem:[%s1599_s28 + $0x7e8] sm:$0xff]  ;;  %v956_v58 = vadd.f32 %v700_v51, %v444_v50 }
 0x118   : > { %1190 = vst [vmem:[%s1620_s20 + $0x730] sm:$0xff] %v934_v56  ;;  %v446_v56 = vld [vmem:[%s1599_s28 + $0x7f0] sm:$0xff]  ;;  %v957_v61 = vadd.f32 %v701_v54, %v445_v53 }
 0x119   : > { %1191 = vst [vmem:[%s1620_s20 + $0x738] sm:$0xff] %v935_v59  ;;  %v447_v59 = vld [vmem:[%s1599_s28 + $0x7f8] sm:$0xff] }
 0x11a   : > { %1192 = vst [vmem:[%s1620_s20 + $0x740] sm:$0xff] %v936_v62  ;;  %v958_v62 = vadd.f32 %v702_v57, %v446_v56  ;;  %v959_v63 = vadd.f32 %v703_v60, %v447_v59 }
 0x11b   : > { %1193 = vst [vmem:[%s1620_s20 + $0x748] sm:$0xff] %v937_v1 }
 0x11c   : > { %1194 = vst [vmem:[%s1620_s20 + $0x750] sm:$0xff] %v938_v4 }
 0x11d   : > { %1195 = vst [vmem:[%s1620_s20 + $0x758] sm:$0xff] %v939_v7 }
 0x11e   : > { %1196 = vst [vmem:[%s1620_s20 + $0x760] sm:$0xff] %v940_v10 }
 0x11f   : > { %1197 = vst [vmem:[%s1620_s20 + $0x768] sm:$0xff] %v941_v13 }
 0x120   : > { %1198 = vst [vmem:[%s1620_s20 + $0x770] sm:$0xff] %v942_v16 }
 0x121   : > { %1199 = vst [vmem:[%s1620_s20 + $0x778] sm:$0xff] %v943_v19 }
 0x122   : > { %1200 = vst [vmem:[%s1620_s20 + $0x780] sm:$0xff] %v944_v22 }
 0x123   : > { %1201 = vst [vmem:[%s1620_s20 + $0x788] sm:$0xff] %v945_v25 }
 0x124   : > { %1202 = vst [vmem:[%s1620_s20 + $0x790] sm:$0xff] %v946_v28 }
 0x125   : > { %1203 = vst [vmem:[%s1620_s20 + $0x798] sm:$0xff] %v947_v31 }
 0x126   : > { %1204 = vst [vmem:[%s1620_s20 + $0x7a0] sm:$0xff] %v948_v34 }
 0x127   : > { %1205 = vst [vmem:[%s1620_s20 + $0x7a8] sm:$0xff] %v949_v37 }
 0x128   : > { %1206 = vst [vmem:[%s1620_s20 + $0x7b0] sm:$0xff] %v950_v40 }
 0x129   : > { %1207 = vst [vmem:[%s1620_s20 + $0x7b8] sm:$0xff] %v951_v43 }
 0x12a   : > { %1208 = vst [vmem:[%s1620_s20 + $0x7c0] sm:$0xff] %v952_v46 }
 0x12b   : > { %1209 = vst [vmem:[%s1620_s20 + $0x7c8] sm:$0xff] %v953_v49 }
 0x12c   : > { %1210 = vst [vmem:[%s1620_s20 + $0x7d0] sm:$0xff] %v954_v52 }
 0x12d   : > { %1211 = vst [vmem:[%s1620_s20 + $0x7d8] sm:$0xff] %v955_v55 }
 0x12e   : > { %1212 = vst [vmem:[%s1620_s20 + $0x7e0] sm:$0xff] %v956_v58 }
 0x12f   : > { %1213 = vst [vmem:[%s1620_s20 + $0x7e8] sm:$0xff] %v957_v61 }
 0x130   : > { %1214 = vst [vmem:[%s1620_s20 + $0x7f0] sm:$0xff] %v958_v62 }
 0x131   : > { %1215 = vst [vmem:[%s1620_s20 + $0x7f8] sm:$0xff] %v959_v63 }
 0x132   : > { %1449 = shalt.err (!%p1446_p7)
}
 0x133   : > { %s1492_s25 = smov 4096   ;;  %s1493_s30 = smov 256  }
 0x134   : > { %1344 = dma.vmem_to_hbm [thread:$0]  (%p1559_p11), %s1231_s14, 32768, %s1233_s16, %s1217_s17, %s1492_s25, %s1492_s25, %s1493_s30  }
 0x135 PF: > { %s1247_s3 = sand.u32 1, %s1476_s9   ;;  %p2423_p5 = scmp.ge.s32.totalorder %s1488_s12, 2 }
 0x136   : > { %s1248_s4 = scalar_lea.sflag [#allocation4], %s1247_s3 }
 0x137   : > { %p1351_p8 = pnand %p2423_p5, %p1563_p12 }
 0x139   : > { %p1352_p10 = pneg %p1351_p8 }
 0x13b   : > { %1471 = dma.done.wait (%p1352_p10), %s1248_s4, 32768  }
 0x13c   : > { %1473 = vsyncadd (%p1352_p10), %s1248_s4, 4294934528  ;;  %p15_p2 = scmp.ge.s32.totalorder %s1534_s15, 4   ;;  %s2424_s9 = smov %s1480_s10 }
 0x13d   : > { %s2425_s10 = smov %s1484_s11  ;;  %s2426_s11 = smov %s1546_s18 }
 0x13e   : > { %s2427_s12 = smov %s1534_s15  ;;  %17 = sbr.rel (!%p15_p2) target bundleno = 5 (0x5), region = 76 }
 0x143   :  { %1254 = vsyncpa [#allocation3], 1 }
 0x144   :  { %1256 = vsyncpa [#allocation3 + $0x1], 1 }
 0x145   :  { %1257 = vsyncpa [#allocation4], 1 }
 0x146   :  { %1259 = vsyncpa [#allocation4 + $0x1], 1 }

</bundles_post_ra>
